<compile_context>
chip_gen: v7x
topology: tpu7x:2x2x1
jax: 0.10.0
libtpu: 0.0.40
codegen_flags: <defaults>
</compile_context>

<pallas_src>
import functools

import numpy as np
import jax
import jax.numpy as jnp
from jax.experimental import pallas as pl
from jax.experimental.pallas import tpu as pltpu

BN_EPS = 1e-5


def _resblock_kernel(x_ref, w_ref, gb_ref, pool_ref, mask_ref, out_ref, *,
                     batch, chan, height, width, add_residual):
    """Fused ResBlock forward on a lane-dense (N*C, H*W) slab.

    x_ref    : (N*C, H*W)      input, rows ordered (n, c) -> plain NCHW reshape
    w_ref    : (27, N*C, N*C)  per-stage/per-tap kron(I_N, W_t^T) mixing matrices
    gb_ref   : (6, N*C, 1)     [g1, bt1, g2, bt2, g3, bt3] tiled per image row
    pool_ref : (N*C, N*C)      1 where rows share a channel (cross-image BN sum)
    mask_ref : (9, 1, H*W)     per-tap in-image validity mask (handles padding)
    out_ref  : (N*C, H*W)
    """
    nc = batch * chan
    p = height * width
    inv_count = 1.0 / float(batch * p)          # BN count = N * H * W per channel

    x = x_ref[...]                              # (nc, p), 2 full vregs
    pool = pool_ref[...]                        # (nc, nc)

    def conv_bn_relu(inp, stage):
        # --- 3x3 SAME conv: 9 rolled taps, boundary-masked, channel-mixed ---
        acc = None
        for t in range(9):
            dy, dx = divmod(t, 3)
            off = (dy - 1) * width + (dx - 1)   # flattened source offset
            if off == 0:
                tap = inp                        # centre tap: every position valid
            else:
                # rolled[i] = inp[(i + off) mod p]; mask zeroes out-of-image reads
                tap = pltpu.roll(inp, shift=(-off) % p, axis=1)
                tap = tap * mask_ref[t]          # (1, p) broadcast over rows
            term = jnp.dot(w_ref[stage * 9 + t], tap,
                           preferred_element_type=jnp.float32)
            acc = term if acc is None else acc + term

        # --- BatchNorm2d, training-mode batch stats, exact two-pass variance ---
        # pool@acc sums the N images of each channel; lane reduce gives totals.
        tot = jnp.sum(jnp.dot(pool, acc, preferred_element_type=jnp.float32),
                      axis=1, keepdims=True)     # (nc, 1) per-channel sums
        mean = tot * inv_count
        cen = acc - mean
        totv = jnp.sum(jnp.dot(pool, cen * cen,
                               preferred_element_type=jnp.float32),
                       axis=1, keepdims=True)
        var = totv * inv_count                   # biased variance (PyTorch BN)
        y = cen * jax.lax.rsqrt(var + BN_EPS)    # rsqrt on the EUP
        y = y * gb_ref[2 * stage] + gb_ref[2 * stage + 1]   # gamma / beta rows
        return jnp.maximum(y, 0.0)               # ReLU

    net = conv_bn_relu(x, 0)
    net = conv_bn_relu(net, 1)
    net = conv_bn_relu(net, 2)
    if add_residual:
        net = net + x                            # residual straight from vregs
    out_ref[...] = net                           # single unmasked lane-dense store


@jax.jit
def res_block_forward(x_nchw, params):
    """Pallas implementation of ResBlock.forward (input/output in NCHW)."""
    n, in_c, h, w = x_nchw.shape
    out_c = params["w3"].shape[-1]
    if in_c != out_c:
        # TODO(synk): in_channels < out_channels is broken in the PyTorch source
        # (x.view(1) on a multi-element tensor); in_channels > out_channels (skip
        # residual) is not wired up for the packed equal-width weight layout here.
        raise NotImplementedError("only in_channels == out_channels is supported")

    c = out_c
    nc, p = n * c, h * w

    # Conv weights HWIO (3,3,c,c) -> per-tap block-diagonal mixing matrices
    # kron(I_N, W_t^T) of shape (nc, nc); all 3 stages packed into ONE array.
    eye_n = jnp.eye(n, dtype=jnp.float32)

    def stage_mats(w_hwio):
        mats = []
        for t in range(9):
            dy, dx = divmod(t, 3)
            mats.append(jnp.kron(eye_n, w_hwio[dy, dx].T.astype(jnp.float32)))
        return jnp.stack(mats)                                  # (9, nc, nc)

    w_all = jnp.concatenate([stage_mats(params["w1"]),
                             stage_mats(params["w2"]),
                             stage_mats(params["w3"])], axis=0)  # (27, nc, nc)

    # BN affine params tiled per (image, channel) row.  Conv biases are dropped:
    # training-mode BN mean subtraction cancels them exactly.
    def bn_rows(v):
        return jnp.tile(v.reshape(1, c), (n, 1)).reshape(nc, 1).astype(jnp.float32)

    gb_all = jnp.stack([bn_rows(params["g1"]), bn_rows(params["bt1"]),
                        bn_rows(params["g2"]), bn_rows(params["bt2"]),
                        bn_rows(params["g3"]), bn_rows(params["bt3"])])  # (6, nc, 1)

    # pool[i, j] = 1 iff rows i, j carry the same channel (sums over the N images).
    pool = jnp.asarray(np.kron(np.ones((n, n), dtype=np.float32),
                               np.eye(c, dtype=np.float32)))

    # Per-tap validity masks over the flattened (h, w) image (compile-time consts).
    ii = np.arange(p)
    yy, xx = ii // w, ii % w
    masks = np.stack([((yy + dy - 1 >= 0) & (yy + dy - 1 < h) &
                       (xx + dx - 1 >= 0) & (xx + dx - 1 < w))
                      for dy in range(3) for dx in range(3)])
    masks = jnp.asarray(masks.reshape(9, 1, p).astype(np.float32))

    x2d = x_nchw.reshape(nc, p).astype(jnp.float32)   # pure reshape, no transpose

    kern = functools.partial(_resblock_kernel, batch=n, chan=c, height=h, width=w,
                             add_residual=True)
    vmem = pl.BlockSpec(memory_space=pltpu.MemorySpace.VMEM)

    # TODO(synk): for much larger N / H*W, grid over rows ("parallel") with a
    # two-pass BN (partial sums, then apply) to use both v7x TensorCores.
    out2d = pl.pallas_call(
        kern,
        out_shape=jax.ShapeDtypeStruct((nc, p), jnp.float32),
        in_specs=[vmem] * 5,
        out_specs=vmem,
    )(x2d, w_all, gb_all, pool, masks)

    return out2d.reshape(n, c, h, w)


# ----------------------------- pure-JAX reference -----------------------------
def _ref_stage(x, w, b, g, bt):
    y = jax.lax.conv_general_dilated(
        x, w, window_strides=(1, 1), padding="SAME",
        dimension_numbers=("NHWC", "HWIO", "NHWC")) + b.reshape(1, 1, 1, -1)
    mean = jnp.mean(y, axis=(0, 1, 2), keepdims=True)
    var = jnp.mean((y - mean) ** 2, axis=(0, 1, 2), keepdims=True)
    y = (y - mean) * jax.lax.rsqrt(var + BN_EPS)
    y = y * g.reshape(1, 1, 1, -1) + bt.reshape(1, 1, 1, -1)
    return jnp.maximum(y, 0.0)


def res_block_ref(x_nchw, params):
    in_c = x_nchw.shape[1]
    out_c = params["w3"].shape[-1]
    x = jnp.transpose(x_nchw, (0, 2, 3, 1))
    net = _ref_stage(x, params["w1"], params["b1"], params["g1"], params["bt1"])
    net = _ref_stage(net, params["w2"], params["b2"], params["g2"], params["bt2"])
    net = _ref_stage(net, params["w3"], params["b3"], params["g3"], params["bt3"])
    if in_c == out_c:
        net = net + x
    return jnp.transpose(net, (0, 3, 1, 2))


# ----------------------------------- main -------------------------------------
if __name__ == "__main__":
    N, C, H, W = 2, 4, 16, 16  # in_channels == out_channels (residual path valid)

    key = jax.random.PRNGKey(0)
    keys = jax.random.split(key, 10)
    x_nchw = jax.random.normal(keys[0], (N, C, H, W), jnp.float32)

    def conv_init(k, cin, cout):
        bound = 1.0 / ((cin * 9) ** 0.5)  # PyTorch Conv2d default init bound
        kw, kb = jax.random.split(k)
        w = jax.random.uniform(kw, (3, 3, cin, cout), jnp.float32, -bound, bound)
        b = jax.random.uniform(kb, (cout,), jnp.float32, -bound, bound)
        return w, b

    def bn_init(k, c):
        kg, kb = jax.random.split(k)
        g = 1.0 + 0.1 * jax.random.normal(kg, (c,), jnp.float32)
        bt = 0.1 * jax.random.normal(kb, (c,), jnp.float32)
        return g, bt

    w1, b1 = conv_init(keys[1], C, C)
    w2, b2 = conv_init(keys[2], C, C)
    w3, b3 = conv_init(keys[3], C, C)
    g1, bt1 = bn_init(keys[4], C)
    g2, bt2 = bn_init(keys[5], C)
    g3, bt3 = bn_init(keys[6], C)

    params = dict(w1=w1, b1=b1, g1=g1, bt1=bt1,
                  w2=w2, b2=b2, g2=g2, bt2=bt2,
                  w3=w3, b3=b3, g3=g3, bt3=bt3)

    out = jax.block_until_ready(res_block_forward(x_nchw, params))
    ref = jax.block_until_ready(res_block_ref(x_nchw, params))

    assert out.shape == (N, C, H, W)
    assert jnp.allclose(out, ref, atol=1e-4, rtol=1e-4), float(
        jnp.max(jnp.abs(out - ref)))

    print("KERNEL_OK")
</pallas_src>

<mosaic_0001>
module attributes {stable_mosaic.version = 11 : i64} {
  func.func @_resblock_kernel(%arg0: memref<8x256xf32, #tpu.memory_space<vmem>>, %arg1: memref<27x8x8xf32, #tpu.memory_space<vmem>>, %arg2: memref<6x8x1xf32, #tpu.memory_space<vmem>>, %arg3: memref<8x8xf32, #tpu.memory_space<vmem>>, %arg4: memref<9x1x256xf32, #tpu.memory_space<vmem>>, %arg5: memref<8x256xf32, #tpu.memory_space<vmem>>) attributes {dimension_semantics = [], scalar_prefetch = 0 : i64, scratch_operands = 0 : i64, tpu.core_type = #tpu.core_type<tc>} {
    %c0 = arith.constant 0 : index
    %c0_0 = arith.constant 0 : index
    %0 = vector.load %arg0[%c0, %c0_0] : memref<8x256xf32, #tpu.memory_space<vmem>>, vector<8x256xf32>
    %c0_1 = arith.constant 0 : index
    %c0_2 = arith.constant 0 : index
    %1 = vector.load %arg3[%c0_1, %c0_2] : memref<8x8xf32, #tpu.memory_space<vmem>>, vector<8x8xf32>
    %c17_i32 = arith.constant 17 : i32
    %2 = tpu.dynamic_rotate %0 by %c17_i32 dim 1 : vector<8x256xf32>, i32 -> vector<8x256xf32>
    %c0_3 = arith.constant 0 : index
    %c0_4 = arith.constant 0 : index
    %c0_5 = arith.constant 0 : index
    %3 = vector.load %arg4[%c0_3, %c0_4, %c0_5] : memref<9x1x256xf32, #tpu.memory_space<vmem>>, vector<1x1x256xf32>
    %4 = vector.shape_cast %3 : vector<1x1x256xf32> to vector<1x256xf32>
    %5 = vector.broadcast %4 : vector<1x256xf32> to vector<8x256xf32>
    %6 = arith.mulf %2, %5 : vector<8x256xf32>
    %c0_6 = arith.constant 0 : index
    %c0_7 = arith.constant 0 : index
    %c0_8 = arith.constant 0 : index
    %7 = vector.load %arg1[%c0_6, %c0_7, %c0_8] : memref<27x8x8xf32, #tpu.memory_space<vmem>>, vector<1x8x8xf32>
    %8 = vector.shape_cast %7 : vector<1x8x8xf32> to vector<8x8xf32>
    %cst = arith.constant dense<0.000000e+00> : vector<8x256xf32>
    %9 = tpu.matmul %8, %6, %cst {dimension_numbers = #tpu.dot_dimension_numbers<[1], [0], [0], [1], [0, 0, 1, 1], [], []>} : vector<8x8xf32>, vector<8x256xf32>, vector<8x256xf32> -> vector<8x256xf32>
    %c16_i32 = arith.constant 16 : i32
    %10 = tpu.dynamic_rotate %0 by %c16_i32 dim 1 : vector<8x256xf32>, i32 -> vector<8x256xf32>
    %c1 = arith.constant 1 : index
    %c0_9 = arith.constant 0 : index
    %c0_10 = arith.constant 0 : index
    %11 = vector.load %arg4[%c1, %c0_9, %c0_10] : memref<9x1x256xf32, #tpu.memory_space<vmem>>, vector<1x1x256xf32>
    %12 = vector.shape_cast %11 : vector<1x1x256xf32> to vector<1x256xf32>
    %13 = vector.broadcast %12 : vector<1x256xf32> to vector<8x256xf32>
    %14 = arith.mulf %10, %13 : vector<8x256xf32>
    %c1_11 = arith.constant 1 : index
    %c0_12 = arith.constant 0 : index
    %c0_13 = arith.constant 0 : index
    %15 = vector.load %arg1[%c1_11, %c0_12, %c0_13] : memref<27x8x8xf32, #tpu.memory_space<vmem>>, vector<1x8x8xf32>
    %16 = vector.shape_cast %15 : vector<1x8x8xf32> to vector<8x8xf32>
    %cst_14 = arith.constant dense<0.000000e+00> : vector<8x256xf32>
    %17 = tpu.matmul %16, %14, %cst_14 {dimension_numbers = #tpu.dot_dimension_numbers<[1], [0], [0], [1], [0, 0, 1, 1], [], []>} : vector<8x8xf32>, vector<8x256xf32>, vector<8x256xf32> -> vector<8x256xf32>
    %18 = arith.addf %9, %17 : vector<8x256xf32>
    %c15_i32 = arith.constant 15 : i32
    %19 = tpu.dynamic_rotate %0 by %c15_i32 dim 1 : vector<8x256xf32>, i32 -> vector<8x256xf32>
    %c2 = arith.constant 2 : index
    %c0_15 = arith.constant 0 : index
    %c0_16 = arith.constant 0 : index
    %20 = vector.load %arg4[%c2, %c0_15, %c0_16] : memref<9x1x256xf32, #tpu.memory_space<vmem>>, vector<1x1x256xf32>
    %21 = vector.shape_cast %20 : vector<1x1x256xf32> to vector<1x256xf32>
    %22 = vector.broadcast %21 : vector<1x256xf32> to vector<8x256xf32>
    %23 = arith.mulf %19, %22 : vector<8x256xf32>
    %c2_17 = arith.constant 2 : index
    %c0_18 = arith.constant 0 : index
    %c0_19 = arith.constant 0 : index
    %24 = vector.load %arg1[%c2_17, %c0_18, %c0_19] : memref<27x8x8xf32, #tpu.memory_space<vmem>>, vector<1x8x8xf32>
    %25 = vector.shape_cast %24 : vector<1x8x8xf32> to vector<8x8xf32>
    %cst_20 = arith.constant dense<0.000000e+00> : vector<8x256xf32>
    %26 = tpu.matmul %25, %23, %cst_20 {dimension_numbers = #tpu.dot_dimension_numbers<[1], [0], [0], [1], [0, 0, 1, 1], [], []>} : vector<8x8xf32>, vector<8x256xf32>, vector<8x256xf32> -> vector<8x256xf32>
    %27 = arith.addf %18, %26 : vector<8x256xf32>
    %c1_i32 = arith.constant 1 : i32
    %28 = tpu.dynamic_rotate %0 by %c1_i32 dim 1 : vector<8x256xf32>, i32 -> vector<8x256xf32>
    %c3 = arith.constant 3 : index
    %c0_21 = arith.constant 0 : index
    %c0_22 = arith.constant 0 : index
    %29 = vector.load %arg4[%c3, %c0_21, %c0_22] : memref<9x1x256xf32, #tpu.memory_space<vmem>>, vector<1x1x256xf32>
    %30 = vector.shape_cast %29 : vector<1x1x256xf32> to vector<1x256xf32>
    %31 = vector.broadcast %30 : vector<1x256xf32> to vector<8x256xf32>
    %32 = arith.mulf %28, %31 : vector<8x256xf32>
    %c3_23 = arith.constant 3 : index
    %c0_24 = arith.constant 0 : index
    %c0_25 = arith.constant 0 : index
    %33 = vector.load %arg1[%c3_23, %c0_24, %c0_25] : memref<27x8x8xf32, #tpu.memory_space<vmem>>, vector<1x8x8xf32>
    %34 = vector.shape_cast %33 : vector<1x8x8xf32> to vector<8x8xf32>
    %cst_26 = arith.constant dense<0.000000e+00> : vector<8x256xf32>
    %35 = tpu.matmul %34, %32, %cst_26 {dimension_numbers = #tpu.dot_dimension_numbers<[1], [0], [0], [1], [0, 0, 1, 1], [], []>} : vector<8x8xf32>, vector<8x256xf32>, vector<8x256xf32> -> vector<8x256xf32>
    %36 = arith.addf %27, %35 : vector<8x256xf32>
    %c4 = arith.constant 4 : index
    %c0_27 = arith.constant 0 : index
    %c0_28 = arith.constant 0 : index
    %37 = vector.load %arg1[%c4, %c0_27, %c0_28] : memref<27x8x8xf32, #tpu.memory_space<vmem>>, vector<1x8x8xf32>
    %38 = vector.shape_cast %37 : vector<1x8x8xf32> to vector<8x8xf32>
    %cst_29 = arith.constant dense<0.000000e+00> : vector<8x256xf32>
    %39 = tpu.matmul %38, %0, %cst_29 {dimension_numbers = #tpu.dot_dimension_numbers<[1], [0], [0], [1], [0, 0, 1, 1], [], []>} : vector<8x8xf32>, vector<8x256xf32>, vector<8x256xf32> -> vector<8x256xf32>
    %40 = arith.addf %36, %39 : vector<8x256xf32>
    %c255_i32 = arith.constant 255 : i32
    %41 = tpu.dynamic_rotate %0 by %c255_i32 dim 1 : vector<8x256xf32>, i32 -> vector<8x256xf32>
    %c5 = arith.constant 5 : index
    %c0_30 = arith.constant 0 : index
    %c0_31 = arith.constant 0 : index
    %42 = vector.load %arg4[%c5, %c0_30, %c0_31] : memref<9x1x256xf32, #tpu.memory_space<vmem>>, vector<1x1x256xf32>
    %43 = vector.shape_cast %42 : vector<1x1x256xf32> to vector<1x256xf32>
    %44 = vector.broadcast %43 : vector<1x256xf32> to vector<8x256xf32>
    %45 = arith.mulf %41, %44 : vector<8x256xf32>
    %c5_32 = arith.constant 5 : index
    %c0_33 = arith.constant 0 : index
    %c0_34 = arith.constant 0 : index
    %46 = vector.load %arg1[%c5_32, %c0_33, %c0_34] : memref<27x8x8xf32, #tpu.memory_space<vmem>>, vector<1x8x8xf32>
    %47 = vector.shape_cast %46 : vector<1x8x8xf32> to vector<8x8xf32>
    %cst_35 = arith.constant dense<0.000000e+00> : vector<8x256xf32>
    %48 = tpu.matmul %47, %45, %cst_35 {dimension_numbers = #tpu.dot_dimension_numbers<[1], [0], [0], [1], [0, 0, 1, 1], [], []>} : vector<8x8xf32>, vector<8x256xf32>, vector<8x256xf32> -> vector<8x256xf32>
    %49 = arith.addf %40, %48 : vector<8x256xf32>
    %c241_i32 = arith.constant 241 : i32
    %50 = tpu.dynamic_rotate %0 by %c241_i32 dim 1 : vector<8x256xf32>, i32 -> vector<8x256xf32>
    %c6 = arith.constant 6 : index
    %c0_36 = arith.constant 0 : index
    %c0_37 = arith.constant 0 : index
    %51 = vector.load %arg4[%c6, %c0_36, %c0_37] : memref<9x1x256xf32, #tpu.memory_space<vmem>>, vector<1x1x256xf32>
    %52 = vector.shape_cast %51 : vector<1x1x256xf32> to vector<1x256xf32>
    %53 = vector.broadcast %52 : vector<1x256xf32> to vector<8x256xf32>
    %54 = arith.mulf %50, %53 : vector<8x256xf32>
    %c6_38 = arith.constant 6 : index
    %c0_39 = arith.constant 0 : index
    %c0_40 = arith.constant 0 : index
    %55 = vector.load %arg1[%c6_38, %c0_39, %c0_40] : memref<27x8x8xf32, #tpu.memory_space<vmem>>, vector<1x8x8xf32>
    %56 = vector.shape_cast %55 : vector<1x8x8xf32> to vector<8x8xf32>
    %cst_41 = arith.constant dense<0.000000e+00> : vector<8x256xf32>
    %57 = tpu.matmul %56, %54, %cst_41 {dimension_numbers = #tpu.dot_dimension_numbers<[1], [0], [0], [1], [0, 0, 1, 1], [], []>} : vector<8x8xf32>, vector<8x256xf32>, vector<8x256xf32> -> vector<8x256xf32>
    %58 = arith.addf %49, %57 : vector<8x256xf32>
    %c240_i32 = arith.constant 240 : i32
    %59 = tpu.dynamic_rotate %0 by %c240_i32 dim 1 : vector<8x256xf32>, i32 -> vector<8x256xf32>
    %c7 = arith.constant 7 : index
    %c0_42 = arith.constant 0 : index
    %c0_43 = arith.constant 0 : index
    %60 = vector.load %arg4[%c7, %c0_42, %c0_43] : memref<9x1x256xf32, #tpu.memory_space<vmem>>, vector<1x1x256xf32>
    %61 = vector.shape_cast %60 : vector<1x1x256xf32> to vector<1x256xf32>
    %62 = vector.broadcast %61 : vector<1x256xf32> to vector<8x256xf32>
    %63 = arith.mulf %59, %62 : vector<8x256xf32>
    %c7_44 = arith.constant 7 : index
    %c0_45 = arith.constant 0 : index
    %c0_46 = arith.constant 0 : index
    %64 = vector.load %arg1[%c7_44, %c0_45, %c0_46] : memref<27x8x8xf32, #tpu.memory_space<vmem>>, vector<1x8x8xf32>
    %65 = vector.shape_cast %64 : vector<1x8x8xf32> to vector<8x8xf32>
    %cst_47 = arith.constant dense<0.000000e+00> : vector<8x256xf32>
    %66 = tpu.matmul %65, %63, %cst_47 {dimension_numbers = #tpu.dot_dimension_numbers<[1], [0], [0], [1], [0, 0, 1, 1], [], []>} : vector<8x8xf32>, vector<8x256xf32>, vector<8x256xf32> -> vector<8x256xf32>
    %67 = arith.addf %58, %66 : vector<8x256xf32>
    %c239_i32 = arith.constant 239 : i32
    %68 = tpu.dynamic_rotate %0 by %c239_i32 dim 1 : vector<8x256xf32>, i32 -> vector<8x256xf32>
    %c8 = arith.constant 8 : index
    %c0_48 = arith.constant 0 : index
    %c0_49 = arith.constant 0 : index
    %69 = vector.load %arg4[%c8, %c0_48, %c0_49] : memref<9x1x256xf32, #tpu.memory_space<vmem>>, vector<1x1x256xf32>
    %70 = vector.shape_cast %69 : vector<1x1x256xf32> to vector<1x256xf32>
    %71 = vector.broadcast %70 : vector<1x256xf32> to vector<8x256xf32>
    %72 = arith.mulf %68, %71 : vector<8x256xf32>
    %c8_50 = arith.constant 8 : index
    %c0_51 = arith.constant 0 : index
    %c0_52 = arith.constant 0 : index
    %73 = vector.load %arg1[%c8_50, %c0_51, %c0_52] : memref<27x8x8xf32, #tpu.memory_space<vmem>>, vector<1x8x8xf32>
    %74 = vector.shape_cast %73 : vector<1x8x8xf32> to vector<8x8xf32>
    %cst_53 = arith.constant dense<0.000000e+00> : vector<8x256xf32>
    %75 = tpu.matmul %74, %72, %cst_53 {dimension_numbers = #tpu.dot_dimension_numbers<[1], [0], [0], [1], [0, 0, 1, 1], [], []>} : vector<8x8xf32>, vector<8x256xf32>, vector<8x256xf32> -> vector<8x256xf32>
    %76 = arith.addf %67, %75 : vector<8x256xf32>
    %cst_54 = arith.constant dense<0.000000e+00> : vector<8x256xf32>
    %77 = tpu.matmul %1, %76, %cst_54 {dimension_numbers = #tpu.dot_dimension_numbers<[1], [0], [0], [1], [0, 0, 1, 1], [], []>} : vector<8x8xf32>, vector<8x256xf32>, vector<8x256xf32> -> vector<8x256xf32>
    %cst_55 = arith.constant dense<0.000000e+00> : vector<8xf32>
    %78 = vector.multi_reduction <add>, %77, %cst_55 [1] : vector<8x256xf32> to vector<8xf32>
    %79 = vector.shape_cast %78 : vector<8xf32> to vector<8x1xf32>
    %cst_56 = arith.constant 0.001953125 : f32
    %80 = vector.broadcast %cst_56 : f32 to vector<8x1xf32>
    %81 = arith.mulf %79, %80 : vector<8x1xf32>
    %82 = vector.broadcast %81 : vector<8x1xf32> to vector<8x256xf32>
    %83 = arith.subf %76, %82 : vector<8x256xf32>
    %84 = arith.mulf %83, %83 : vector<8x256xf32>
    %cst_57 = arith.constant dense<0.000000e+00> : vector<8x256xf32>
    %85 = tpu.matmul %1, %84, %cst_57 {dimension_numbers = #tpu.dot_dimension_numbers<[1], [0], [0], [1], [0, 0, 1, 1], [], []>} : vector<8x8xf32>, vector<8x256xf32>, vector<8x256xf32> -> vector<8x256xf32>
    %cst_58 = arith.constant dense<0.000000e+00> : vector<8xf32>
    %86 = vector.multi_reduction <add>, %85, %cst_58 [1] : vector<8x256xf32> to vector<8xf32>
    %87 = vector.shape_cast %86 : vector<8xf32> to vector<8x1xf32>
    %cst_59 = arith.constant 0.001953125 : f32
    %88 = vector.broadcast %cst_59 : f32 to vector<8x1xf32>
    %89 = arith.mulf %87, %88 : vector<8x1xf32>
    %cst_60 = arith.constant 9.99999974E-6 : f32
    %90 = vector.broadcast %cst_60 : f32 to vector<8x1xf32>
    %91 = arith.addf %89, %90 : vector<8x1xf32>
    %92 = math.rsqrt %91 : vector<8x1xf32>
    %93 = vector.broadcast %92 : vector<8x1xf32> to vector<8x256xf32>
    %94 = arith.mulf %83, %93 : vector<8x256xf32>
    %c0_61 = arith.constant 0 : index
    %c0_62 = arith.constant 0 : index
    %c0_63 = arith.constant 0 : index
    %95 = vector.load %arg2[%c0_61, %c0_62, %c0_63] : memref<6x8x1xf32, #tpu.memory_space<vmem>>, vector<1x8x1xf32>
    %96 = vector.shape_cast %95 : vector<1x8x1xf32> to vector<8x1xf32>
    %97 = vector.broadcast %96 : vector<8x1xf32> to vector<8x256xf32>
    %98 = arith.mulf %94, %97 : vector<8x256xf32>
    %c1_64 = arith.constant 1 : index
    %c0_65 = arith.constant 0 : index
    %c0_66 = arith.constant 0 : index
    %99 = vector.load %arg2[%c1_64, %c0_65, %c0_66] : memref<6x8x1xf32, #tpu.memory_space<vmem>>, vector<1x8x1xf32>
    %100 = vector.shape_cast %99 : vector<1x8x1xf32> to vector<8x1xf32>
    %101 = vector.broadcast %100 : vector<8x1xf32> to vector<8x256xf32>
    %102 = arith.addf %98, %101 : vector<8x256xf32>
    %cst_67 = arith.constant 0.000000e+00 : f32
    %103 = vector.broadcast %cst_67 : f32 to vector<8x256xf32>
    %104 = arith.maximumf %102, %103 : vector<8x256xf32>
    %c17_i32_68 = arith.constant 17 : i32
    %105 = tpu.dynamic_rotate %104 by %c17_i32_68 dim 1 : vector<8x256xf32>, i32 -> vector<8x256xf32>
    %c0_69 = arith.constant 0 : index
    %c0_70 = arith.constant 0 : index
    %c0_71 = arith.constant 0 : index
    %106 = vector.load %arg4[%c0_69, %c0_70, %c0_71] : memref<9x1x256xf32, #tpu.memory_space<vmem>>, vector<1x1x256xf32>
    %107 = vector.shape_cast %106 : vector<1x1x256xf32> to vector<1x256xf32>
    %108 = vector.broadcast %107 : vector<1x256xf32> to vector<8x256xf32>
    %109 = arith.mulf %105, %108 : vector<8x256xf32>
    %c9 = arith.constant 9 : index
    %c0_72 = arith.constant 0 : index
    %c0_73 = arith.constant 0 : index
    %110 = vector.load %arg1[%c9, %c0_72, %c0_73] : memref<27x8x8xf32, #tpu.memory_space<vmem>>, vector<1x8x8xf32>
    %111 = vector.shape_cast %110 : vector<1x8x8xf32> to vector<8x8xf32>
    %cst_74 = arith.constant dense<0.000000e+00> : vector<8x256xf32>
    %112 = tpu.matmul %111, %109, %cst_74 {dimension_numbers = #tpu.dot_dimension_numbers<[1], [0], [0], [1], [0, 0, 1, 1], [], []>} : vector<8x8xf32>, vector<8x256xf32>, vector<8x256xf32> -> vector<8x256xf32>
    %c16_i32_75 = arith.constant 16 : i32
    %113 = tpu.dynamic_rotate %104 by %c16_i32_75 dim 1 : vector<8x256xf32>, i32 -> vector<8x256xf32>
    %c1_76 = arith.constant 1 : index
    %c0_77 = arith.constant 0 : index
    %c0_78 = arith.constant 0 : index
    %114 = vector.load %arg4[%c1_76, %c0_77, %c0_78] : memref<9x1x256xf32, #tpu.memory_space<vmem>>, vector<1x1x256xf32>
    %115 = vector.shape_cast %114 : vector<1x1x256xf32> to vector<1x256xf32>
    %116 = vector.broadcast %115 : vector<1x256xf32> to vector<8x256xf32>
    %117 = arith.mulf %113, %116 : vector<8x256xf32>
    %c10 = arith.constant 10 : index
    %c0_79 = arith.constant 0 : index
    %c0_80 = arith.constant 0 : index
    %118 = vector.load %arg1[%c10, %c0_79, %c0_80] : memref<27x8x8xf32, #tpu.memory_space<vmem>>, vector<1x8x8xf32>
    %119 = vector.shape_cast %118 : vector<1x8x8xf32> to vector<8x8xf32>
    %cst_81 = arith.constant dense<0.000000e+00> : vector<8x256xf32>
    %120 = tpu.matmul %119, %117, %cst_81 {dimension_numbers = #tpu.dot_dimension_numbers<[1], [0], [0], [1], [0, 0, 1, 1], [], []>} : vector<8x8xf32>, vector<8x256xf32>, vector<8x256xf32> -> vector<8x256xf32>
    %121 = arith.addf %112, %120 : vector<8x256xf32>
    %c15_i32_82 = arith.constant 15 : i32
    %122 = tpu.dynamic_rotate %104 by %c15_i32_82 dim 1 : vector<8x256xf32>, i32 -> vector<8x256xf32>
    %c2_83 = arith.constant 2 : index
    %c0_84 = arith.constant 0 : index
    %c0_85 = arith.constant 0 : index
    %123 = vector.load %arg4[%c2_83, %c0_84, %c0_85] : memref<9x1x256xf32, #tpu.memory_space<vmem>>, vector<1x1x256xf32>
    %124 = vector.shape_cast %123 : vector<1x1x256xf32> to vector<1x256xf32>
    %125 = vector.broadcast %124 : vector<1x256xf32> to vector<8x256xf32>
    %126 = arith.mulf %122, %125 : vector<8x256xf32>
    %c11 = arith.constant 11 : index
    %c0_86 = arith.constant 0 : index
    %c0_87 = arith.constant 0 : index
    %127 = vector.load %arg1[%c11, %c0_86, %c0_87] : memref<27x8x8xf32, #tpu.memory_space<vmem>>, vector<1x8x8xf32>
    %128 = vector.shape_cast %127 : vector<1x8x8xf32> to vector<8x8xf32>
    %cst_88 = arith.constant dense<0.000000e+00> : vector<8x256xf32>
    %129 = tpu.matmul %128, %126, %cst_88 {dimension_numbers = #tpu.dot_dimension_numbers<[1], [0], [0], [1], [0, 0, 1, 1], [], []>} : vector<8x8xf32>, vector<8x256xf32>, vector<8x256xf32> -> vector<8x256xf32>
    %130 = arith.addf %121, %129 : vector<8x256xf32>
    %c1_i32_89 = arith.constant 1 : i32
    %131 = tpu.dynamic_rotate %104 by %c1_i32_89 dim 1 : vector<8x256xf32>, i32 -> vector<8x256xf32>
    %c3_90 = arith.constant 3 : index
    %c0_91 = arith.constant 0 : index
    %c0_92 = arith.constant 0 : index
    %132 = vector.load %arg4[%c3_90, %c0_91, %c0_92] : memref<9x1x256xf32, #tpu.memory_space<vmem>>, vector<1x1x256xf32>
    %133 = vector.shape_cast %132 : vector<1x1x256xf32> to vector<1x256xf32>
    %134 = vector.broadcast %133 : vector<1x256xf32> to vector<8x256xf32>
    %135 = arith.mulf %131, %134 : vector<8x256xf32>
    %c12 = arith.constant 12 : index
    %c0_93 = arith.constant 0 : index
    %c0_94 = arith.constant 0 : index
    %136 = vector.load %arg1[%c12, %c0_93, %c0_94] : memref<27x8x8xf32, #tpu.memory_space<vmem>>, vector<1x8x8xf32>
    %137 = vector.shape_cast %136 : vector<1x8x8xf32> to vector<8x8xf32>
    %cst_95 = arith.constant dense<0.000000e+00> : vector<8x256xf32>
    %138 = tpu.matmul %137, %135, %cst_95 {dimension_numbers = #tpu.dot_dimension_numbers<[1], [0], [0], [1], [0, 0, 1, 1], [], []>} : vector<8x8xf32>, vector<8x256xf32>, vector<8x256xf32> -> vector<8x256xf32>
    %139 = arith.addf %130, %138 : vector<8x256xf32>
    %c13 = arith.constant 13 : index
    %c0_96 = arith.constant 0 : index
    %c0_97 = arith.constant 0 : index
    %140 = vector.load %arg1[%c13, %c0_96, %c0_97] : memref<27x8x8xf32, #tpu.memory_space<vmem>>, vector<1x8x8xf32>
    %141 = vector.shape_cast %140 : vector<1x8x8xf32> to vector<8x8xf32>
    %cst_98 = arith.constant dense<0.000000e+00> : vector<8x256xf32>
    %142 = tpu.matmul %141, %104, %cst_98 {dimension_numbers = #tpu.dot_dimension_numbers<[1], [0], [0], [1], [0, 0, 1, 1], [], []>} : vector<8x8xf32>, vector<8x256xf32>, vector<8x256xf32> -> vector<8x256xf32>
    %143 = arith.addf %139, %142 : vector<8x256xf32>
    %c255_i32_99 = arith.constant 255 : i32
    %144 = tpu.dynamic_rotate %104 by %c255_i32_99 dim 1 : vector<8x256xf32>, i32 -> vector<8x256xf32>
    %c5_100 = arith.constant 5 : index
    %c0_101 = arith.constant 0 : index
    %c0_102 = arith.constant 0 : index
    %145 = vector.load %arg4[%c5_100, %c0_101, %c0_102] : memref<9x1x256xf32, #tpu.memory_space<vmem>>, vector<1x1x256xf32>
    %146 = vector.shape_cast %145 : vector<1x1x256xf32> to vector<1x256xf32>
    %147 = vector.broadcast %146 : vector<1x256xf32> to vector<8x256xf32>
    %148 = arith.mulf %144, %147 : vector<8x256xf32>
    %c14 = arith.constant 14 : index
    %c0_103 = arith.constant 0 : index
    %c0_104 = arith.constant 0 : index
    %149 = vector.load %arg1[%c14, %c0_103, %c0_104] : memref<27x8x8xf32, #tpu.memory_space<vmem>>, vector<1x8x8xf32>
    %150 = vector.shape_cast %149 : vector<1x8x8xf32> to vector<8x8xf32>
    %cst_105 = arith.constant dense<0.000000e+00> : vector<8x256xf32>
    %151 = tpu.matmul %150, %148, %cst_105 {dimension_numbers = #tpu.dot_dimension_numbers<[1], [0], [0], [1], [0, 0, 1, 1], [], []>} : vector<8x8xf32>, vector<8x256xf32>, vector<8x256xf32> -> vector<8x256xf32>
    %152 = arith.addf %143, %151 : vector<8x256xf32>
    %c241_i32_106 = arith.constant 241 : i32
    %153 = tpu.dynamic_rotate %104 by %c241_i32_106 dim 1 : vector<8x256xf32>, i32 -> vector<8x256xf32>
    %c6_107 = arith.constant 6 : index
    %c0_108 = arith.constant 0 : index
    %c0_109 = arith.constant 0 : index
    %154 = vector.load %arg4[%c6_107, %c0_108, %c0_109] : memref<9x1x256xf32, #tpu.memory_space<vmem>>, vector<1x1x256xf32>
    %155 = vector.shape_cast %154 : vector<1x1x256xf32> to vector<1x256xf32>
    %156 = vector.broadcast %155 : vector<1x256xf32> to vector<8x256xf32>
    %157 = arith.mulf %153, %156 : vector<8x256xf32>
    %c15 = arith.constant 15 : index
    %c0_110 = arith.constant 0 : index
    %c0_111 = arith.constant 0 : index
    %158 = vector.load %arg1[%c15, %c0_110, %c0_111] : memref<27x8x8xf32, #tpu.memory_space<vmem>>, vector<1x8x8xf32>
    %159 = vector.shape_cast %158 : vector<1x8x8xf32> to vector<8x8xf32>
    %cst_112 = arith.constant dense<0.000000e+00> : vector<8x256xf32>
    %160 = tpu.matmul %159, %157, %cst_112 {dimension_numbers = #tpu.dot_dimension_numbers<[1], [0], [0], [1], [0, 0, 1, 1], [], []>} : vector<8x8xf32>, vector<8x256xf32>, vector<8x256xf32> -> vector<8x256xf32>
    %161 = arith.addf %152, %160 : vector<8x256xf32>
    %c240_i32_113 = arith.constant 240 : i32
    %162 = tpu.dynamic_rotate %104 by %c240_i32_113 dim 1 : vector<8x256xf32>, i32 -> vector<8x256xf32>
    %c7_114 = arith.constant 7 : index
    %c0_115 = arith.constant 0 : index
    %c0_116 = arith.constant 0 : index
    %163 = vector.load %arg4[%c7_114, %c0_115, %c0_116] : memref<9x1x256xf32, #tpu.memory_space<vmem>>, vector<1x1x256xf32>
    %164 = vector.shape_cast %163 : vector<1x1x256xf32> to vector<1x256xf32>
    %165 = vector.broadcast %164 : vector<1x256xf32> to vector<8x256xf32>
    %166 = arith.mulf %162, %165 : vector<8x256xf32>
    %c16 = arith.constant 16 : index
    %c0_117 = arith.constant 0 : index
    %c0_118 = arith.constant 0 : index
    %167 = vector.load %arg1[%c16, %c0_117, %c0_118] : memref<27x8x8xf32, #tpu.memory_space<vmem>>, vector<1x8x8xf32>
    %168 = vector.shape_cast %167 : vector<1x8x8xf32> to vector<8x8xf32>
    %cst_119 = arith.constant dense<0.000000e+00> : vector<8x256xf32>
    %169 = tpu.matmul %168, %166, %cst_119 {dimension_numbers = #tpu.dot_dimension_numbers<[1], [0], [0], [1], [0, 0, 1, 1], [], []>} : vector<8x8xf32>, vector<8x256xf32>, vector<8x256xf32> -> vector<8x256xf32>
    %170 = arith.addf %161, %169 : vector<8x256xf32>
    %c239_i32_120 = arith.constant 239 : i32
    %171 = tpu.dynamic_rotate %104 by %c239_i32_120 dim 1 : vector<8x256xf32>, i32 -> vector<8x256xf32>
    %c8_121 = arith.constant 8 : index
    %c0_122 = arith.constant 0 : index
    %c0_123 = arith.constant 0 : index
    %172 = vector.load %arg4[%c8_121, %c0_122, %c0_123] : memref<9x1x256xf32, #tpu.memory_space<vmem>>, vector<1x1x256xf32>
    %173 = vector.shape_cast %172 : vector<1x1x256xf32> to vector<1x256xf32>
    %174 = vector.broadcast %173 : vector<1x256xf32> to vector<8x256xf32>
    %175 = arith.mulf %171, %174 : vector<8x256xf32>
    %c17 = arith.constant 17 : index
    %c0_124 = arith.constant 0 : index
    %c0_125 = arith.constant 0 : index
    %176 = vector.load %arg1[%c17, %c0_124, %c0_125] : memref<27x8x8xf32, #tpu.memory_space<vmem>>, vector<1x8x8xf32>
    %177 = vector.shape_cast %176 : vector<1x8x8xf32> to vector<8x8xf32>
    %cst_126 = arith.constant dense<0.000000e+00> : vector<8x256xf32>
    %178 = tpu.matmul %177, %175, %cst_126 {dimension_numbers = #tpu.dot_dimension_numbers<[1], [0], [0], [1], [0, 0, 1, 1], [], []>} : vector<8x8xf32>, vector<8x256xf32>, vector<8x256xf32> -> vector<8x256xf32>
    %179 = arith.addf %170, %178 : vector<8x256xf32>
    %cst_127 = arith.constant dense<0.000000e+00> : vector<8x256xf32>
    %180 = tpu.matmul %1, %179, %cst_127 {dimension_numbers = #tpu.dot_dimension_numbers<[1], [0], [0], [1], [0, 0, 1, 1], [], []>} : vector<8x8xf32>, vector<8x256xf32>, vector<8x256xf32> -> vector<8x256xf32>
    %cst_128 = arith.constant dense<0.000000e+00> : vector<8xf32>
    %181 = vector.multi_reduction <add>, %180, %cst_128 [1] : vector<8x256xf32> to vector<8xf32>
    %182 = vector.shape_cast %181 : vector<8xf32> to vector<8x1xf32>
    %cst_129 = arith.constant 0.001953125 : f32
    %183 = vector.broadcast %cst_129 : f32 to vector<8x1xf32>
    %184 = arith.mulf %182, %183 : vector<8x1xf32>
    %185 = vector.broadcast %184 : vector<8x1xf32> to vector<8x256xf32>
    %186 = arith.subf %179, %185 : vector<8x256xf32>
    %187 = arith.mulf %186, %186 : vector<8x256xf32>
    %cst_130 = arith.constant dense<0.000000e+00> : vector<8x256xf32>
    %188 = tpu.matmul %1, %187, %cst_130 {dimension_numbers = #tpu.dot_dimension_numbers<[1], [0], [0], [1], [0, 0, 1, 1], [], []>} : vector<8x8xf32>, vector<8x256xf32>, vector<8x256xf32> -> vector<8x256xf32>
    %cst_131 = arith.constant dense<0.000000e+00> : vector<8xf32>
    %189 = vector.multi_reduction <add>, %188, %cst_131 [1] : vector<8x256xf32> to vector<8xf32>
    %190 = vector.shape_cast %189 : vector<8xf32> to vector<8x1xf32>
    %cst_132 = arith.constant 0.001953125 : f32
    %191 = vector.broadcast %cst_132 : f32 to vector<8x1xf32>
    %192 = arith.mulf %190, %191 : vector<8x1xf32>
    %cst_133 = arith.constant 9.99999974E-6 : f32
    %193 = vector.broadcast %cst_133 : f32 to vector<8x1xf32>
    %194 = arith.addf %192, %193 : vector<8x1xf32>
    %195 = math.rsqrt %194 : vector<8x1xf32>
    %196 = vector.broadcast %195 : vector<8x1xf32> to vector<8x256xf32>
    %197 = arith.mulf %186, %196 : vector<8x256xf32>
    %c2_134 = arith.constant 2 : index
    %c0_135 = arith.constant 0 : index
    %c0_136 = arith.constant 0 : index
    %198 = vector.load %arg2[%c2_134, %c0_135, %c0_136] : memref<6x8x1xf32, #tpu.memory_space<vmem>>, vector<1x8x1xf32>
    %199 = vector.shape_cast %198 : vector<1x8x1xf32> to vector<8x1xf32>
    %200 = vector.broadcast %199 : vector<8x1xf32> to vector<8x256xf32>
    %201 = arith.mulf %197, %200 : vector<8x256xf32>
    %c3_137 = arith.constant 3 : index
    %c0_138 = arith.constant 0 : index
    %c0_139 = arith.constant 0 : index
    %202 = vector.load %arg2[%c3_137, %c0_138, %c0_139] : memref<6x8x1xf32, #tpu.memory_space<vmem>>, vector<1x8x1xf32>
    %203 = vector.shape_cast %202 : vector<1x8x1xf32> to vector<8x1xf32>
    %204 = vector.broadcast %203 : vector<8x1xf32> to vector<8x256xf32>
    %205 = arith.addf %201, %204 : vector<8x256xf32>
    %cst_140 = arith.constant 0.000000e+00 : f32
    %206 = vector.broadcast %cst_140 : f32 to vector<8x256xf32>
    %207 = arith.maximumf %205, %206 : vector<8x256xf32>
    %c17_i32_141 = arith.constant 17 : i32
    %208 = tpu.dynamic_rotate %207 by %c17_i32_141 dim 1 : vector<8x256xf32>, i32 -> vector<8x256xf32>
    %c0_142 = arith.constant 0 : index
    %c0_143 = arith.constant 0 : index
    %c0_144 = arith.constant 0 : index
    %209 = vector.load %arg4[%c0_142, %c0_143, %c0_144] : memref<9x1x256xf32, #tpu.memory_space<vmem>>, vector<1x1x256xf32>
    %210 = vector.shape_cast %209 : vector<1x1x256xf32> to vector<1x256xf32>
    %211 = vector.broadcast %210 : vector<1x256xf32> to vector<8x256xf32>
    %212 = arith.mulf %208, %211 : vector<8x256xf32>
    %c18 = arith.constant 18 : index
    %c0_145 = arith.constant 0 : index
    %c0_146 = arith.constant 0 : index
    %213 = vector.load %arg1[%c18, %c0_145, %c0_146] : memref<27x8x8xf32, #tpu.memory_space<vmem>>, vector<1x8x8xf32>
    %214 = vector.shape_cast %213 : vector<1x8x8xf32> to vector<8x8xf32>
    %cst_147 = arith.constant dense<0.000000e+00> : vector<8x256xf32>
    %215 = tpu.matmul %214, %212, %cst_147 {dimension_numbers = #tpu.dot_dimension_numbers<[1], [0], [0], [1], [0, 0, 1, 1], [], []>} : vector<8x8xf32>, vector<8x256xf32>, vector<8x256xf32> -> vector<8x256xf32>
    %c16_i32_148 = arith.constant 16 : i32
    %216 = tpu.dynamic_rotate %207 by %c16_i32_148 dim 1 : vector<8x256xf32>, i32 -> vector<8x256xf32>
    %c1_149 = arith.constant 1 : index
    %c0_150 = arith.constant 0 : index
    %c0_151 = arith.constant 0 : index
    %217 = vector.load %arg4[%c1_149, %c0_150, %c0_151] : memref<9x1x256xf32, #tpu.memory_space<vmem>>, vector<1x1x256xf32>
    %218 = vector.shape_cast %217 : vector<1x1x256xf32> to vector<1x256xf32>
    %219 = vector.broadcast %218 : vector<1x256xf32> to vector<8x256xf32>
    %220 = arith.mulf %216, %219 : vector<8x256xf32>
    %c19 = arith.constant 19 : index
    %c0_152 = arith.constant 0 : index
    %c0_153 = arith.constant 0 : index
    %221 = vector.load %arg1[%c19, %c0_152, %c0_153] : memref<27x8x8xf32, #tpu.memory_space<vmem>>, vector<1x8x8xf32>
    %222 = vector.shape_cast %221 : vector<1x8x8xf32> to vector<8x8xf32>
    %cst_154 = arith.constant dense<0.000000e+00> : vector<8x256xf32>
    %223 = tpu.matmul %222, %220, %cst_154 {dimension_numbers = #tpu.dot_dimension_numbers<[1], [0], [0], [1], [0, 0, 1, 1], [], []>} : vector<8x8xf32>, vector<8x256xf32>, vector<8x256xf32> -> vector<8x256xf32>
    %224 = arith.addf %215, %223 : vector<8x256xf32>
    %c15_i32_155 = arith.constant 15 : i32
    %225 = tpu.dynamic_rotate %207 by %c15_i32_155 dim 1 : vector<8x256xf32>, i32 -> vector<8x256xf32>
    %c2_156 = arith.constant 2 : index
    %c0_157 = arith.constant 0 : index
    %c0_158 = arith.constant 0 : index
    %226 = vector.load %arg4[%c2_156, %c0_157, %c0_158] : memref<9x1x256xf32, #tpu.memory_space<vmem>>, vector<1x1x256xf32>
    %227 = vector.shape_cast %226 : vector<1x1x256xf32> to vector<1x256xf32>
    %228 = vector.broadcast %227 : vector<1x256xf32> to vector<8x256xf32>
    %229 = arith.mulf %225, %228 : vector<8x256xf32>
    %c20 = arith.constant 20 : index
    %c0_159 = arith.constant 0 : index
    %c0_160 = arith.constant 0 : index
    %230 = vector.load %arg1[%c20, %c0_159, %c0_160] : memref<27x8x8xf32, #tpu.memory_space<vmem>>, vector<1x8x8xf32>
    %231 = vector.shape_cast %230 : vector<1x8x8xf32> to vector<8x8xf32>
    %cst_161 = arith.constant dense<0.000000e+00> : vector<8x256xf32>
    %232 = tpu.matmul %231, %229, %cst_161 {dimension_numbers = #tpu.dot_dimension_numbers<[1], [0], [0], [1], [0, 0, 1, 1], [], []>} : vector<8x8xf32>, vector<8x256xf32>, vector<8x256xf32> -> vector<8x256xf32>
    %233 = arith.addf %224, %232 : vector<8x256xf32>
    %c1_i32_162 = arith.constant 1 : i32
    %234 = tpu.dynamic_rotate %207 by %c1_i32_162 dim 1 : vector<8x256xf32>, i32 -> vector<8x256xf32>
    %c3_163 = arith.constant 3 : index
    %c0_164 = arith.constant 0 : index
    %c0_165 = arith.constant 0 : index
    %235 = vector.load %arg4[%c3_163, %c0_164, %c0_165] : memref<9x1x256xf32, #tpu.memory_space<vmem>>, vector<1x1x256xf32>
    %236 = vector.shape_cast %235 : vector<1x1x256xf32> to vector<1x256xf32>
    %237 = vector.broadcast %236 : vector<1x256xf32> to vector<8x256xf32>
    %238 = arith.mulf %234, %237 : vector<8x256xf32>
    %c21 = arith.constant 21 : index
    %c0_166 = arith.constant 0 : index
    %c0_167 = arith.constant 0 : index
    %239 = vector.load %arg1[%c21, %c0_166, %c0_167] : memref<27x8x8xf32, #tpu.memory_space<vmem>>, vector<1x8x8xf32>
    %240 = vector.shape_cast %239 : vector<1x8x8xf32> to vector<8x8xf32>
    %cst_168 = arith.constant dense<0.000000e+00> : vector<8x256xf32>
    %241 = tpu.matmul %240, %238, %cst_168 {dimension_numbers = #tpu.dot_dimension_numbers<[1], [0], [0], [1], [0, 0, 1, 1], [], []>} : vector<8x8xf32>, vector<8x256xf32>, vector<8x256xf32> -> vector<8x256xf32>
    %242 = arith.addf %233, %241 : vector<8x256xf32>
    %c22 = arith.constant 22 : index
    %c0_169 = arith.constant 0 : index
    %c0_170 = arith.constant 0 : index
    %243 = vector.load %arg1[%c22, %c0_169, %c0_170] : memref<27x8x8xf32, #tpu.memory_space<vmem>>, vector<1x8x8xf32>
    %244 = vector.shape_cast %243 : vector<1x8x8xf32> to vector<8x8xf32>
    %cst_171 = arith.constant dense<0.000000e+00> : vector<8x256xf32>
    %245 = tpu.matmul %244, %207, %cst_171 {dimension_numbers = #tpu.dot_dimension_numbers<[1], [0], [0], [1], [0, 0, 1, 1], [], []>} : vector<8x8xf32>, vector<8x256xf32>, vector<8x256xf32> -> vector<8x256xf32>
    %246 = arith.addf %242, %245 : vector<8x256xf32>
    %c255_i32_172 = arith.constant 255 : i32
    %247 = tpu.dynamic_rotate %207 by %c255_i32_172 dim 1 : vector<8x256xf32>, i32 -> vector<8x256xf32>
    %c5_173 = arith.constant 5 : index
    %c0_174 = arith.constant 0 : index
    %c0_175 = arith.constant 0 : index
    %248 = vector.load %arg4[%c5_173, %c0_174, %c0_175] : memref<9x1x256xf32, #tpu.memory_space<vmem>>, vector<1x1x256xf32>
    %249 = vector.shape_cast %248 : vector<1x1x256xf32> to vector<1x256xf32>
    %250 = vector.broadcast %249 : vector<1x256xf32> to vector<8x256xf32>
    %251 = arith.mulf %247, %250 : vector<8x256xf32>
    %c23 = arith.constant 23 : index
    %c0_176 = arith.constant 0 : index
    %c0_177 = arith.constant 0 : index
    %252 = vector.load %arg1[%c23, %c0_176, %c0_177] : memref<27x8x8xf32, #tpu.memory_space<vmem>>, vector<1x8x8xf32>
    %253 = vector.shape_cast %252 : vector<1x8x8xf32> to vector<8x8xf32>
    %cst_178 = arith.constant dense<0.000000e+00> : vector<8x256xf32>
    %254 = tpu.matmul %253, %251, %cst_178 {dimension_numbers = #tpu.dot_dimension_numbers<[1], [0], [0], [1], [0, 0, 1, 1], [], []>} : vector<8x8xf32>, vector<8x256xf32>, vector<8x256xf32> -> vector<8x256xf32>
    %255 = arith.addf %246, %254 : vector<8x256xf32>
    %c241_i32_179 = arith.constant 241 : i32
    %256 = tpu.dynamic_rotate %207 by %c241_i32_179 dim 1 : vector<8x256xf32>, i32 -> vector<8x256xf32>
    %c6_180 = arith.constant 6 : index
    %c0_181 = arith.constant 0 : index
    %c0_182 = arith.constant 0 : index
    %257 = vector.load %arg4[%c6_180, %c0_181, %c0_182] : memref<9x1x256xf32, #tpu.memory_space<vmem>>, vector<1x1x256xf32>
    %258 = vector.shape_cast %257 : vector<1x1x256xf32> to vector<1x256xf32>
    %259 = vector.broadcast %258 : vector<1x256xf32> to vector<8x256xf32>
    %260 = arith.mulf %256, %259 : vector<8x256xf32>
    %c24 = arith.constant 24 : index
    %c0_183 = arith.constant 0 : index
    %c0_184 = arith.constant 0 : index
    %261 = vector.load %arg1[%c24, %c0_183, %c0_184] : memref<27x8x8xf32, #tpu.memory_space<vmem>>, vector<1x8x8xf32>
    %262 = vector.shape_cast %261 : vector<1x8x8xf32> to vector<8x8xf32>
    %cst_185 = arith.constant dense<0.000000e+00> : vector<8x256xf32>
    %263 = tpu.matmul %262, %260, %cst_185 {dimension_numbers = #tpu.dot_dimension_numbers<[1], [0], [0], [1], [0, 0, 1, 1], [], []>} : vector<8x8xf32>, vector<8x256xf32>, vector<8x256xf32> -> vector<8x256xf32>
    %264 = arith.addf %255, %263 : vector<8x256xf32>
    %c240_i32_186 = arith.constant 240 : i32
    %265 = tpu.dynamic_rotate %207 by %c240_i32_186 dim 1 : vector<8x256xf32>, i32 -> vector<8x256xf32>
    %c7_187 = arith.constant 7 : index
    %c0_188 = arith.constant 0 : index
    %c0_189 = arith.constant 0 : index
    %266 = vector.load %arg4[%c7_187, %c0_188, %c0_189] : memref<9x1x256xf32, #tpu.memory_space<vmem>>, vector<1x1x256xf32>
    %267 = vector.shape_cast %266 : vector<1x1x256xf32> to vector<1x256xf32>
    %268 = vector.broadcast %267 : vector<1x256xf32> to vector<8x256xf32>
    %269 = arith.mulf %265, %268 : vector<8x256xf32>
    %c25 = arith.constant 25 : index
    %c0_190 = arith.constant 0 : index
    %c0_191 = arith.constant 0 : index
    %270 = vector.load %arg1[%c25, %c0_190, %c0_191] : memref<27x8x8xf32, #tpu.memory_space<vmem>>, vector<1x8x8xf32>
    %271 = vector.shape_cast %270 : vector<1x8x8xf32> to vector<8x8xf32>
    %cst_192 = arith.constant dense<0.000000e+00> : vector<8x256xf32>
    %272 = tpu.matmul %271, %269, %cst_192 {dimension_numbers = #tpu.dot_dimension_numbers<[1], [0], [0], [1], [0, 0, 1, 1], [], []>} : vector<8x8xf32>, vector<8x256xf32>, vector<8x256xf32> -> vector<8x256xf32>
    %273 = arith.addf %264, %272 : vector<8x256xf32>
    %c239_i32_193 = arith.constant 239 : i32
    %274 = tpu.dynamic_rotate %207 by %c239_i32_193 dim 1 : vector<8x256xf32>, i32 -> vector<8x256xf32>
    %c8_194 = arith.constant 8 : index
    %c0_195 = arith.constant 0 : index
    %c0_196 = arith.constant 0 : index
    %275 = vector.load %arg4[%c8_194, %c0_195, %c0_196] : memref<9x1x256xf32, #tpu.memory_space<vmem>>, vector<1x1x256xf32>
    %276 = vector.shape_cast %275 : vector<1x1x256xf32> to vector<1x256xf32>
    %277 = vector.broadcast %276 : vector<1x256xf32> to vector<8x256xf32>
    %278 = arith.mulf %274, %277 : vector<8x256xf32>
    %c26 = arith.constant 26 : index
    %c0_197 = arith.constant 0 : index
    %c0_198 = arith.constant 0 : index
    %279 = vector.load %arg1[%c26, %c0_197, %c0_198] : memref<27x8x8xf32, #tpu.memory_space<vmem>>, vector<1x8x8xf32>
    %280 = vector.shape_cast %279 : vector<1x8x8xf32> to vector<8x8xf32>
    %cst_199 = arith.constant dense<0.000000e+00> : vector<8x256xf32>
    %281 = tpu.matmul %280, %278, %cst_199 {dimension_numbers = #tpu.dot_dimension_numbers<[1], [0], [0], [1], [0, 0, 1, 1], [], []>} : vector<8x8xf32>, vector<8x256xf32>, vector<8x256xf32> -> vector<8x256xf32>
    %282 = arith.addf %273, %281 : vector<8x256xf32>
    %cst_200 = arith.constant dense<0.000000e+00> : vector<8x256xf32>
    %283 = tpu.matmul %1, %282, %cst_200 {dimension_numbers = #tpu.dot_dimension_numbers<[1], [0], [0], [1], [0, 0, 1, 1], [], []>} : vector<8x8xf32>, vector<8x256xf32>, vector<8x256xf32> -> vector<8x256xf32>
    %cst_201 = arith.constant dense<0.000000e+00> : vector<8xf32>
    %284 = vector.multi_reduction <add>, %283, %cst_201 [1] : vector<8x256xf32> to vector<8xf32>
    %285 = vector.shape_cast %284 : vector<8xf32> to vector<8x1xf32>
    %cst_202 = arith.constant 0.001953125 : f32
    %286 = vector.broadcast %cst_202 : f32 to vector<8x1xf32>
    %287 = arith.mulf %285, %286 : vector<8x1xf32>
    %288 = vector.broadcast %287 : vector<8x1xf32> to vector<8x256xf32>
    %289 = arith.subf %282, %288 : vector<8x256xf32>
    %290 = arith.mulf %289, %289 : vector<8x256xf32>
    %cst_203 = arith.constant dense<0.000000e+00> : vector<8x256xf32>
    %291 = tpu.matmul %1, %290, %cst_203 {dimension_numbers = #tpu.dot_dimension_numbers<[1], [0], [0], [1], [0, 0, 1, 1], [], []>} : vector<8x8xf32>, vector<8x256xf32>, vector<8x256xf32> -> vector<8x256xf32>
    %cst_204 = arith.constant dense<0.000000e+00> : vector<8xf32>
    %292 = vector.multi_reduction <add>, %291, %cst_204 [1] : vector<8x256xf32> to vector<8xf32>
    %293 = vector.shape_cast %292 : vector<8xf32> to vector<8x1xf32>
    %cst_205 = arith.constant 0.001953125 : f32
    %294 = vector.broadcast %cst_205 : f32 to vector<8x1xf32>
    %295 = arith.mulf %293, %294 : vector<8x1xf32>
    %cst_206 = arith.constant 9.99999974E-6 : f32
    %296 = vector.broadcast %cst_206 : f32 to vector<8x1xf32>
    %297 = arith.addf %295, %296 : vector<8x1xf32>
    %298 = math.rsqrt %297 : vector<8x1xf32>
    %299 = vector.broadcast %298 : vector<8x1xf32> to vector<8x256xf32>
    %300 = arith.mulf %289, %299 : vector<8x256xf32>
    %c4_207 = arith.constant 4 : index
    %c0_208 = arith.constant 0 : index
    %c0_209 = arith.constant 0 : index
    %301 = vector.load %arg2[%c4_207, %c0_208, %c0_209] : memref<6x8x1xf32, #tpu.memory_space<vmem>>, vector<1x8x1xf32>
    %302 = vector.shape_cast %301 : vector<1x8x1xf32> to vector<8x1xf32>
    %303 = vector.broadcast %302 : vector<8x1xf32> to vector<8x256xf32>
    %304 = arith.mulf %300, %303 : vector<8x256xf32>
    %c5_210 = arith.constant 5 : index
    %c0_211 = arith.constant 0 : index
    %c0_212 = arith.constant 0 : index
    %305 = vector.load %arg2[%c5_210, %c0_211, %c0_212] : memref<6x8x1xf32, #tpu.memory_space<vmem>>, vector<1x8x1xf32>
    %306 = vector.shape_cast %305 : vector<1x8x1xf32> to vector<8x1xf32>
    %307 = vector.broadcast %306 : vector<8x1xf32> to vector<8x256xf32>
    %308 = arith.addf %304, %307 : vector<8x256xf32>
    %cst_213 = arith.constant 0.000000e+00 : f32
    %309 = vector.broadcast %cst_213 : f32 to vector<8x256xf32>
    %310 = arith.maximumf %308, %309 : vector<8x256xf32>
    %311 = arith.addf %310, %0 : vector<8x256xf32>
    %c0_214 = arith.constant 0 : index
    %c0_215 = arith.constant 0 : index
    %312 = vector.load %arg5[%c0_214, %c0_215] : memref<8x256xf32, #tpu.memory_space<vmem>>, vector<8x256xf32>
    tpu.vector_store %arg5[%c0_214, %c0_215], %311 {strides = array<i32>} : memref<8x256xf32, #tpu.memory_space<vmem>>, vector<8x256xf32>,
    return
  }
}

</mosaic_0001>

<bundles_post_ra>
// kernel: tile.29
= control target key start
LH: loop header
LB: loop body
LE: loop exit
PB: predicated region body
PF: predicated region fallthrough
CT: control target
= control target key end

     0   :  { %s22_s0 = inlined_call_operand.vmem [shape: f32[4], index: 0, kind: input, shape index: {}]   ;;  %s23_s1 = inlined_call_operand.vmem [shape: f32[2,1,1,4], index: 1, kind: output, shape index: {}]  }
   0x1   :  { %v4_v0 = vld [vmem:[%s22_s0] ss:$0 sm:$0xff] }
   0x2   :  { %5 = vst [vmem:[%s23_s1] sm:$0x3] %v4_v0 }

// kernel: tile.43
= control target key start
LH: loop header
LB: loop body
LE: loop exit
PB: predicated region body
PF: predicated region fallthrough
CT: control target
= control target key end

     0   :  { %vm7_vm0 = vcmask 31744   ;;  %vm13_vm1 = vcmask 64544   ;;  %s39_s0 = inlined_call_operand.vmem [shape: f32[2,1,1,4], index: 0, kind: input, shape index: {}]   ;;  %s40_s1 = inlined_call_operand.vmem [shape: f32[1,8,1], index: 1, kind: output, shape index: {}]  }
   0x1   :  { %v4_v0 = vld [vmem:[%s39_s0] sm:$0x3]  ;;  %s22_s0 = smov 4  }
   0x2   :  { %5 = vst [vmem:[#allocation1] sm:$0x3] %v4_v0 }
   0x9   :  { %v10_v1 = vld [vmem:[#allocation1 + $0x1] sm:$0x1]   ;;  %v6_v2 = vld [vmem:[#allocation1] sm:$0x1]  }
   0xa   :  { %11 = vrot.lane.b32.xlu0 %v10_v1, %s22_s0  ;;  %8 = vst.msk [vmem:[#allocation0] sm:$0x1] %vm7_vm0, %v6_v2  }
  0x7c   :  { %v12_v3 = vpop.permute.xlu0 %11  }
  0x7d   :  { %14 = vst.msk [vmem:[#allocation0] sm:$0x1] %vm13_vm1, %v12_v3  }
  0x84   :  { %v18_v4 = vld [vmem:[#allocation0] sm:$0x1] }
  0x85   :  { %20 = vst [vmem:[%s40_s1] sm:$0x1] %v18_v4 }

// kernel: res_block_forward.1
= control target key start
LH: loop header
LB: loop body
LE: loop exit
PB: predicated region body
PF: predicated region fallthrough
CT: control target
= control target key end

     0   :  { %v3104_v1 = vmov 0.0   ;;  %s3105_s20 = smov 1   ;;  %s3106_s21 = smov 127   ;;  %v27_v3 = vlaneseq  ;;  %vm71_vm3 = vcmask 64512   ;;  %s3658_s0 = inlined_call_operand.vmem [shape: f32[8,256], index: 0, kind: input, shape index: {}]   ;;  %s3659_s4 = inlined_call_operand.vmem [shape: f32[9,1,256], index: 4, kind: input, shape index: {}]   ;;  %s3660_s1 = inlined_call_operand.vmem [shape: f32[27,8,8], index: 1, kind: input, shape index: {}]   ;;  %s3661_s3 = inlined_call_operand.vmem [shape: f32[8,8], index: 3, kind: input, shape index: {}]   ;;  %s3662_s2 = inlined_call_operand.vmem [shape: f32[6,8,1], index: 2, kind: input, shape index: {}]   ;;  %s3663_s5 = inlined_call_operand.vmem [shape: f32[8,256], index: 5, kind: output, shape index: {}]  }
   0x1   :  { %v3147_v0 = vld [vmem:[%s3658_s0] sm:$0xff]  ;;  %411 = vmatprep.mubr.f32.mxu0 %v3104_v1  ;;  %139 = vmatprep.mubr.f32.mxu1 %v3104_v1  ;;  %v3158_v2 = vld [vmem:[%s3658_s0 + $0x8] sm:$0xff]  ;;  %s3107_s24 = smov 16   ;;  %s3108_s25 = smov 113   ;;  %v2974_v25 = vld [vmem:[%s3660_s1 + $0x18] sm:$0xff] }
   0x2   :  { %320 = vrot.lane.b32.xlu0 %v3147_v0, %s3105_s20  ;;  %498 = vrot.lane.b32.xlu1 %v3147_v0, %s3106_s21  ;;  %s3109_s26 = smov 17   ;;  %s3110_s27 = smov 112   ;;  %v35_v4 = vshrl.u32 %v27_v3, 7  ;;  %v3188_v5 = vand.u32 127, %v27_v3  ;;  %v2973_v8 = vld [vmem:[%s3659_s4 + $0x6] sm:$0x3] }
   0x3   :  { %s3111_s28 = smov 15   ;;  %s3112_s29 = smov 111   ;;  %v2978_v11 = vld [vmem:[%s3659_s4 + $0xa] sm:$0x3]  ;;  %v2966_v14 = vld [vmem:[%s3659_s4 + $0x2] sm:$0x3] }
   0x4   :  { %v3190_v6 = vsub.s32 0, %v35_v4  ;;  %v3192_v7 = vsub.s32 1, %v35_v4  ;;  %vm324_vm0 = vcmp.lt.s32.totalorder %v3188_v5, 1  ;;  %vm502_vm1 = vcmp.lt.s32.totalorder %v3188_v5, 127  ;;  %v2981_v31 = vld [vmem:[%s3659_s4 + $0xc] sm:$0x3] }
   0x5   :  { %vm51_vm2 = vcmp.lt.s32.totalorder %v3188_v5, 16  ;;  %vm602_vm4 = vcmp.lt.s32.totalorder %v3188_v5, 113  ;;  %v2967_v35 = vld [vmem:[%s3660_s1 + $0x8] sm:$0xff]  ;;  %v32_v36 = vld [vmem:[%s3659_s4] sm:$0x3]  ;;  %vm29_vm5 = vcmp.lt.s32.totalorder %v3188_v5, 17 }
   0x6   :  { %322 = vrot.lane.b32.xlu0 %v3158_v2, %s3105_s20  ;;  %500 = vrot.lane.b32.xlu1 %v3158_v2, %s3106_s21  ;;  %v3203_v12 = vrot.slane %v2973_v8, %v3192_v7  ;;  %v3206_v13 = vrot.slane %v2973_v8, %v3190_v6  ;;  %v3212_v16 = vrot.slane %v2978_v11, %v3192_v7  ;;  %v2976_v45 = vld [vmem:[%s3660_s1 + $0x20] sm:$0xff]  ;;  %v2984_v51 = vld [vmem:[%s3659_s4 + $0xe] sm:$0x3]  ;;  %vm702_vm6 = vcmp.lt.s32.totalorder %v3188_v5, 112 }
   0x7   :  { %v3224_v23 = vrot.slane %v2966_v14, %v3192_v7  ;;  %v3227_v24 = vrot.slane %v2966_v14, %v3190_v6  ;;  %v3246_v34 = vrot.slane %v2978_v11, %v3190_v6  ;;  %v3259_v39 = vrot.slane %v2981_v31, %v3192_v7  ;;  %v46_v55 = vld [vmem:[%s3660_s1] sm:$0xff]  ;;  %v2979_v3 = vld [vmem:[%s3660_s1 + $0x28] sm:$0xff]  ;;  %v2987_v14 = vld [vmem:[%s3659_s4 + $0x10] sm:$0x3] }
   0x8   :  { %v3266_v42 = vrot.slane %v32_v36, %v3190_v6  ;;  %v3269_v43 = vrot.slane %v32_v36, %v3192_v7  ;;  %v3289_v54 = vrot.slane %v2981_v31, %v3190_v6  ;;  %v2970_v56 = vld [vmem:[%s3659_s4 + $0x4] sm:$0x3]  ;;  %v3301_v59 = vrot.slane %v2984_v51, %v3192_v7  ;;  %v2985_v31 = vld [vmem:[%s3660_s1 + $0x38] sm:$0xff] }
   0x9   :  { %vm224_vm7 = vcmp.lt.s32.totalorder %v3188_v5, 15  ;;  %v3308_v62 = vrot.slane %v2970_v56, %v3190_v6  ;;  %v3311_v63 = vrot.slane %v2970_v56, %v3192_v7  ;;  %vm802_vm8 = vcmp.lt.s32.totalorder %v3188_v5, 111 }
   0xa   :  { %49 = vrot.lane.b32.xlu1 %v3158_v2, %s3107_s24  ;;  %47 = vrot.lane.b32.xlu0 %v3147_v0, %s3107_s24 }
   0xe   :  { %600 = vrot.lane.b32.xlu1 %v3158_v2, %s3108_s25  ;;  %598 = vrot.lane.b32.xlu0 %v3147_v0, %s3108_s25 }
  0x12   :  { %25 = vrot.lane.b32.xlu1 %v3158_v2, %s3109_s26  ;;  %23 = vrot.lane.b32.xlu0 %v3147_v0, %s3109_s26 }
  0x16   :  { %700 = vrot.lane.b32.xlu1 %v3158_v2, %s3110_s27  ;;  %698 = vrot.lane.b32.xlu0 %v3147_v0, %s3110_s27 }
  0x1a   :  { %222 = vrot.lane.b32.xlu1 %v3158_v2, %s3111_s28  ;;  %220 = vrot.lane.b32.xlu0 %v3147_v0, %s3111_s28 }
  0x1e   :  { %800 = vrot.lane.b32.xlu1 %v3158_v2, %s3112_s29  ;;  %798 = vrot.lane.b32.xlu0 %v3147_v0, %s3112_s29 }
  0x74   :  { %v321_v9 = vpop.permute.xlu0 %320  ;;  %v499_v10 = vpop.permute.xlu1 %498 }
  0x78   :  { %v323_v15 = vpop.permute.xlu0 %322  ;;  %v501_v17 = vpop.permute.xlu1 %500 }
  0x79   :  { %v326_v18 = vsel %vm324_vm0, %v323_v15, %v321_v9  ;;  %v504_v19 = vsel %vm502_vm1, %v501_v17, %v499_v10  ;;  %v325_v20 = vsel %vm324_vm0, %v321_v9, %v323_v15  ;;  %v503_v37 = vsel %vm502_vm1, %v499_v10, %v501_v17 }
  0x7a   :  { %v341_v21 = vmul.f32 %v3203_v12, %v325_v20  ;;  %v340_v22 = vmul.f32 %v3206_v13, %v326_v18  ;;  %v519_v26 = vmul.f32 %v3212_v16, %v504_v19  ;;  %v518_v44 = vmul.f32 %v3246_v34, %v503_v37  ;;  %v2971_v19 = vld [vmem:[%s3660_s1 + $0x10] sm:$0xff] }
  0x7b   :  { %v3331_v18 = vrot.slane %v2984_v51, %v3190_v6 }
  0x7c   :  { %347 = vmatprep.subr.mxu0 %v341_v21  ;;  %v50_v27 = vpop.permute.xlu1 %49  ;;  %v48_v28 = vpop.permute.xlu0 %47 }
  0x7d   :  { %348 = vmatpush1.msra.mxu0 %v340_v22  ;;  %v53_v29 = vsel %vm51_vm2, %v50_v27, %v48_v28  ;;  %v52_v30 = vsel %vm51_vm2, %v48_v28, %v50_v27  ;;  %v3340_v22 = vrot.slane %v2987_v14, %v3192_v7  ;;  %v2982_v28 = vld [vmem:[%s3660_s1 + $0x30] sm:$0xff]  ;;  %v3354_v7 = vrot.slane %v2987_v14, %v3190_v6  ;;  %v2988_v6 = vld [vmem:[%s3660_s1 + $0x40] sm:$0xff] }
  0x7e   :  { %2975 = vmatmul.mubr.msk.f32.vlgmr.msra.gmra.mrb[0].mxu0 %vm71_vm3, %v2974_v25  ;;  %v68_v32 = vmul.f32 %v3224_v23, %v52_v30  ;;  %v67_v33 = vmul.f32 %v3227_v24, %v53_v29  ;;  %425 = vmatprep.subr.mxu0 %v3158_v2 }
  0x7f   :  { %426 = vmatpush1.msra.mxu0 %v3147_v0  ;;  %489 = vmatprep.mubr.f32.mxu0 %v3104_v1 }
  0x80   :  { %v601_v38 = vpop.permute.xlu1 %600  ;;  %75 = vmatprep.subr.mxu1 %v68_v32  ;;  %v599_v40 = vpop.permute.xlu0 %598  ;;  %525 = vmatprep.subr.mxu0 %v519_v26 }
  0x81   :  { %v604_v41 = vsel %vm602_vm4, %v601_v38, %v599_v40  ;;  %76 = vmatpush1.msra.mxu1 %v67_v33  ;;  %v603_v57 = vsel %vm602_vm4, %v599_v40, %v601_v38 }
  0x82   :  { %2968 = vmatmul.mubr.msk.f32.vlgmr.msra.gmra.mrb[0].mxu1 %vm71_vm3, %v2967_v35  ;;  %v619_v46 = vmul.f32 %v3259_v39, %v604_v41  ;;  %v618_v0 = vmul.f32 %v3289_v54, %v603_v57  ;;  %v3372_v41 = vld [vmem:[%s3661_s3] sm:$0xff] }
  0x83   :  { %213 = vmatprep.mubr.f32.mxu1 %v3104_v1 }
  0x84   :  { %v26_v47 = vpop.permute.xlu1 %25  ;;  %v24_v48 = vpop.permute.xlu0 %23 }
  0x85   :  { %v30_v49 = vsel %vm29_vm5, %v24_v48, %v26_v47  ;;  %v31_v50 = vsel %vm29_vm5, %v26_v47, %v24_v48 }
  0x86   :  { %2977 = vmatmul.mubr.msk.f32.vlgmr.msra.gmra.mrb[0].mxu0 %vm71_vm3, %v2976_v45  ;;  %v44_v52 = vmul.f32 %v3266_v42, %v31_v50  ;;  %v45_v53 = vmul.f32 %v3269_v43, %v30_v49 }
  0x87   :  { %526 = vmatpush1.msra.mxu0 %v518_v44  ;;  %589 = vmatprep.mubr.f32.mxu0 %v3104_v1 }
  0x88   :  { %v701_v58 = vpop.permute.xlu1 %700  ;;  %149 = vmatprep.subr.mxu1 %v45_v53  ;;  %v699_v60 = vpop.permute.xlu0 %698  ;;  %625 = vmatprep.subr.mxu0 %v619_v46  ;;  %v3113_v53 = vmov 0  }
  0x89   :  { %v704_v61 = vsel %vm702_vm6, %v701_v58, %v699_v60  ;;  %150 = vmatpush1.msra.mxu1 %v44_v52  ;;  %v703_v20 = vsel %vm702_vm6, %v699_v60, %v701_v58  ;;  %3095 = vset.pattern.permute.xlu0 %v3113_v53  ;;  %v2992_v60 = vld [vmem:[%s3662_s2 + $0x8] sm:$0xff] }
  0x8a   :  { %2969 = vmatmul.mubr.msk.f32.vlgmr.msra.gmra.mrb[0].mxu1 %vm71_vm3, %v46_v55  ;;  %v719_v4 = vmul.f32 %v3301_v59, %v704_v61  ;;  %v718_v27 = vmul.f32 %v3331_v18, %v703_v20  ;;  %v1059_v55 = vld [vmem:[%s3662_s2] sm:$0xff]  ;;  %3096 = vset.pattern.permute.xlu1 %v3113_v53 }
  0x8b   :  { %311 = vmatprep.mubr.f32.mxu1 %v3104_v1 }
  0x8c   :  { %v223_v8 = vpop.permute.xlu1 %222  ;;  %v221_v9 = vpop.permute.xlu0 %220 }
  0x8d   :  { %v225_v10 = vsel %vm224_vm7, %v221_v9, %v223_v8  ;;  %v226_v11 = vsel %vm224_vm7, %v223_v8, %v221_v9 }
  0x8e   :  { %2980 = vmatmul.mubr.msk.f32.vlgmr.msra.gmra.mrb[0].mxu0 %vm71_vm3, %v2979_v3  ;;  %v240_v15 = vmul.f32 %v3308_v62, %v226_v11  ;;  %v241_v17 = vmul.f32 %v3311_v63, %v225_v10 }
  0x8f   :  { %626 = vmatpush1.msra.mxu0 %v618_v0  ;;  %689 = vmatprep.mubr.f32.mxu0 %v3104_v1 }
  0x90   :  { %247 = vmatprep.subr.mxu1 %v241_v17  ;;  %725 = vmatprep.subr.mxu0 %v719_v4  ;;  %v801_v21 = vpop.permute.xlu1 %800  ;;  %v799_v25 = vpop.permute.xlu0 %798 }
  0x91   :  { %248 = vmatpush1.msra.mxu1 %v240_v15  ;;  %v804_v26 = vsel %vm802_vm8, %v801_v21, %v799_v25  ;;  %v803_v30 = vsel %vm802_vm8, %v799_v25, %v801_v21 }
  0x92   :  { %2972 = vmatmul.mubr.msk.f32.vlgmr.msra.gmra.mrb[0].mxu1 %vm71_vm3, %v2971_v19  ;;  %v819_v29 = vmul.f32 %v3340_v22, %v804_v26  ;;  %v818_v32 = vmul.f32 %v3354_v7, %v803_v30 }
  0x93   :  { %965 = vmatprep.mubr.f32.mxu1 %v3104_v1 }
  0x96   :  { %2983 = vmatmul.mubr.msk.f32.vlgmr.msra.gmra.mrb[0].mxu0 %vm71_vm3, %v2982_v28 }
  0x97   :  { %726 = vmatpush1.msra.mxu0 %v718_v27  ;;  %789 = vmatprep.mubr.f32.mxu0 %v3104_v1 }
  0x98   :  { %825 = vmatprep.subr.mxu0 %v819_v29 }
  0x9e   :  { %2986 = vmatmul.mubr.msk.f32.vlgmr.msra.gmra.mrb[0].mxu0 %vm71_vm3, %v2985_v31  ;;  %v2994_v31 = vld [vmem:[%s3660_s1 + $0x50] sm:$0xff] }
  0x9f   :  { %826 = vmatpush1.msra.mxu0 %v818_v32  ;;  %889 = vmatprep.mubr.f32.mxu0 %v3104_v1 }
  0xa6   :  { %2989 = vmatmul.mubr.msk.f32.vlgmr.msra.gmra.mrb[0].mxu0 %vm71_vm3, %v2988_v6 }
  0xa7   :  { %1904 = vmatprep.mubr.f32.mxu0 %v3104_v1 }
 0x165   :  { %v313_v33 = vpop.f32.mrb[0].mxu1 }
 0x166   :  { %v315_v35 = vpop.f32.mrb[1].mxu1 }
 0x179   :  { %v891_v36 = vpop.f32.mrb[0].mxu0 }
 0x17a   :  { %v3037_v37 = vadd.f32 %v891_v36, %v313_v33  ;;  %v893_v38 = vpop.f32.mrb[1].mxu0 }
 0x17b   :  { %v3038_v40 = vadd.f32 %v893_v38, %v315_v35  ;;  %v2993_v38 = vld [vmem:[%s3660_s1 + $0x48] sm:$0xff] }
 0x17d   :  { %901 = vmatprep.subr.mxu1 %v3038_v40 }
 0x17e   :  { %902 = vmatpush1.msra.mxu1 %v3037_v37 }
 0x17f   :  { %2990 = vmatmul.mubr.msk.f32.vlgmr.msra.gmra.mrb[2].mxu1 %vm71_vm3, %v3372_v41 }
 0x180   :  { %1044 = vmatprep.mubr.f32.mxu1 %v3104_v1 }
 0x252   :  { %v967_v44 = vpop.f32.mrb[2].mxu1 }
 0x253   :  { %v969_v45 = vpop.f32.mrb[3].mxu1 }
 0x254   :  { %v972_v46 = vadd.f32 %v969_v45, %v967_v44 }
 0x256   :  { %973 = vadd.xlane.f32.xlu0 %v972_v46 }
 0x26c   :  { %1062 = vperm.xlu0 %3095, %v1059_v55  }
 0x2e3   :  { %v974_v47 = vpop.xlane.xlu0 %973 }
 0x2e4   :  { %v975_v48 = vmul.f32 0.001953125, %v974_v47 }
 0x2e6   :  { %v976_v49 = vsub.f32 %v3037_v37, %v975_v48  ;;  %v977_v50 = vsub.f32 %v3038_v40, %v975_v48 }
 0x2e8   :  { %v978_v51 = vmul.f32 %v976_v49, %v976_v49  ;;  %v979_v52 = vmul.f32 %v977_v50, %v977_v50 }
 0x2ea   :  { %980 = vmatprep.subr.mxu1 %v979_v52 }
 0x2eb   :  { %981 = vmatpush1.msra.mxu1 %v978_v51  ;;  %v1063_v8 = vpop.permute.xlu0 %1062 }
 0x2ec   :  { %2991 = vmatmul.mubr.msk.f32.vlgmr.msra.gmra.mrb[4].mxu1 %vm71_vm3, %v3372_v41 }
 0x2ed   :  { %1165 = vmatprep.mubr.f32.mxu1 %v3104_v1 }
 0x3bf   :  { %v1046_v56 = vpop.f32.mrb[4].mxu1 }
 0x3c0   :  { %v1048_v57 = vpop.f32.mrb[5].mxu1 }
 0x3c1   :  { %v1051_v58 = vadd.f32 %v1048_v57, %v1046_v56 }
 0x3c3   :  { %1052 = vadd.xlane.f32.xlu1 %v1051_v58 }
 0x3d4   :  { %1071 = vperm.xlu1 %3096, %v2992_v60  }
 0x450   :  { %v1053_v61 = vpop.xlane.xlu1 %1052 }
 0x451   :  { %v1054_v0 = vmul.f32 0.001953125, %v1053_v61  ;;  %v2999_v61 = vld [vmem:[%s3660_s1 + $0x60] sm:$0xff] }
 0x453   :  { %v1055_v3 = vadd.f32 1e-05, %v1054_v0 }
 0x454   :  { %v1072_v11 = vpop.permute.xlu1 %1071 }
 0x455   :  { %3097 = vrsqrt.f32 %v1055_v3 }
 0x45f   :  { %v3098_v4 = vpop.eup %3097 }
 0x460   :  { %v1057_v9 = vmul.f32 %v3098_v4, %v976_v49  ;;  %v1058_v10 = vmul.f32 %v3098_v4, %v977_v50  ;;  %v2997_v49 = vld [vmem:[%s3660_s1 + $0x58] sm:$0xff] }
 0x462   :  { %v1065_v14 = vmul.f32 %v1063_v8, %v1057_v9  ;;  %v1066_v15 = vmul.f32 %v1063_v8, %v1058_v10  ;;  %v3001_v10 = vld [vmem:[%s3660_s1 + $0x68] sm:$0xff] }
 0x464   :  { %v1074_v17 = vadd.f32 %v1072_v11, %v1065_v14  ;;  %v1075_v19 = vadd.f32 %v1072_v11, %v1066_v15 }
 0x466   :  { %v3386_v20 = vmax.f32 %v1074_v17, 0.0  ;;  %v1077_v21 = vmax.f32 %v1075_v19, 0.0 }
 0x468   :  { %1332 = vrot.lane.b32.xlu0 %v3386_v20, %s3105_s20  ;;  %1088 = vrot.lane.b32.xlu1 %v3386_v20, %s3107_s24 }
 0x46c   :  { %1496 = vrot.lane.b32.xlu0 %v3386_v20, %s3106_s21  ;;  %1090 = vrot.lane.b32.xlu1 %v1077_v21, %s3107_s24 }
 0x470   :  { %1582 = vrot.lane.b32.xlu0 %v3386_v20, %s3108_s25  ;;  %1078 = vrot.lane.b32.xlu1 %v3386_v20, %s3109_s26 }
 0x474   :  { %1668 = vrot.lane.b32.xlu0 %v3386_v20, %s3110_s27  ;;  %1080 = vrot.lane.b32.xlu1 %v1077_v21, %s3109_s26 }
 0x478   :  { %1754 = vrot.lane.b32.xlu0 %v3386_v20, %s3112_s29  ;;  %1246 = vrot.lane.b32.xlu1 %v3386_v20, %s3111_s28 }
 0x47c   :  { %1248 = vrot.lane.b32.xlu1 %v1077_v21, %s3111_s28 }
 0x480   :  { %1334 = vrot.lane.b32.xlu1 %v1077_v21, %s3105_s20 }
 0x484   :  { %1498 = vrot.lane.b32.xlu1 %v1077_v21, %s3106_s21 }
 0x488   :  { %1584 = vrot.lane.b32.xlu1 %v1077_v21, %s3108_s25 }
 0x48c   :  { %1670 = vrot.lane.b32.xlu1 %v1077_v21, %s3110_s27 }
 0x490   :  { %1756 = vrot.lane.b32.xlu1 %v1077_v21, %s3112_s29 }
 0x4da   :  { %v1089_v25 = vpop.permute.xlu1 %1088  ;;  %v1333_v50 = vpop.permute.xlu0 %1332 }
 0x4de   :  { %v1091_v26 = vpop.permute.xlu1 %1090  ;;  %v1497_v58 = vpop.permute.xlu0 %1496 }
 0x4df   :  { %v1092_v27 = vsel %vm51_vm2, %v1089_v25, %v1091_v26  ;;  %v1093_v28 = vsel %vm51_vm2, %v1091_v26, %v1089_v25 }
 0x4e0   :  { %v1094_v29 = vmul.f32 %v1093_v28, %v3227_v24  ;;  %v1095_v30 = vmul.f32 %v1092_v27, %v3224_v23 }
 0x4e2   :  { %1101 = vmatprep.subr.mxu1 %v1095_v30  ;;  %v1079_v32 = vpop.permute.xlu1 %1078  ;;  %v1583_v4 = vpop.permute.xlu0 %1582 }
 0x4e3   :  { %1102 = vmatpush1.msra.mxu1 %v1094_v29 }
 0x4e4   :  { %2995 = vmatmul.mubr.msk.f32.vlgmr.msra.gmra.mrb[6].mxu1 %vm71_vm3, %v2994_v31  ;;  %v3005_v31 = vld [vmem:[%s3660_s1 + $0x78] sm:$0xff] }
 0x4e5   :  { %1239 = vmatprep.mubr.f32.mxu1 %v3104_v1 }
 0x4e6   :  { %v1081_v6 = vpop.permute.xlu1 %1080  ;;  %v1669_v17 = vpop.permute.xlu0 %1668 }
 0x4e7   :  { %v1082_v33 = vsel %vm29_vm5, %v1079_v32, %v1081_v6  ;;  %v1083_v35 = vsel %vm29_vm5, %v1081_v6, %v1079_v32 }
 0x4e8   :  { %v1084_v36 = vmul.f32 %v1083_v35, %v3266_v42  ;;  %v1085_v37 = vmul.f32 %v1082_v33, %v3269_v43  ;;  %v3007_v35 = vld [vmem:[%s3660_s1 + $0x80] sm:$0xff] }
 0x4ea   :  { %1175 = vmatprep.subr.mxu1 %v1085_v37  ;;  %v1247_v40 = vpop.permute.xlu1 %1246  ;;  %v1755_v28 = vpop.permute.xlu0 %1754  ;;  %v3009_v37 = vld [vmem:[%s3660_s1 + $0x88] sm:$0xff] }
 0x4eb   :  { %1176 = vmatpush1.msra.mxu1 %v1084_v36 }
 0x4ec   :  { %2996 = vmatmul.mubr.msk.f32.vlgmr.msra.gmra.mrb[6].mxu1 %vm71_vm3, %v2993_v38 }
 0x4ed   :  { %1323 = vmatprep.mubr.f32.mxu1 %v3104_v1 }
 0x4ee   :  { %v1249_v44 = vpop.permute.xlu1 %1248 }
 0x4ef   :  { %v1250_v45 = vsel %vm224_vm7, %v1247_v40, %v1249_v44  ;;  %v1251_v46 = vsel %vm224_vm7, %v1249_v44, %v1247_v40 }
 0x4f0   :  { %v1252_v47 = vmul.f32 %v1251_v46, %v3308_v62  ;;  %v1253_v48 = vmul.f32 %v1250_v45, %v3311_v63 }
 0x4f2   :  { %1259 = vmatprep.subr.mxu1 %v1253_v48  ;;  %v1335_v51 = vpop.permute.xlu1 %1334 }
 0x4f3   :  { %v1336_v52 = vsel %vm324_vm0, %v1333_v50, %v1335_v51  ;;  %v1337_v53 = vsel %vm324_vm0, %v1335_v51, %v1333_v50  ;;  %1260 = vmatpush1.msra.mxu1 %v1252_v47  ;;  %v3013_v47 = vld [vmem:[%s3662_s2 + $0x10] sm:$0xff] }
 0x4f4   :  { %v1338_v55 = vmul.f32 %v1337_v53, %v3206_v13  ;;  %v1339_v56 = vmul.f32 %v1336_v52, %v3203_v12  ;;  %2998 = vmatmul.mubr.msk.f32.vlgmr.msra.gmra.mrb[6].mxu1 %vm71_vm3, %v2997_v49 }
 0x4f5   :  { %1409 = vmatprep.mubr.f32.mxu1 %v3104_v1 }
 0x4f6   :  { %1345 = vmatprep.subr.mxu1 %v1339_v56  ;;  %v1499_v57 = vpop.permute.xlu1 %1498 }
 0x4f7   :  { %1346 = vmatpush1.msra.mxu1 %v1338_v55  ;;  %v1501_v60 = vsel %vm502_vm1, %v1499_v57, %v1497_v58  ;;  %v1500_v8 = vsel %vm502_vm1, %v1497_v58, %v1499_v57  ;;  %v3014_v58 = vld [vmem:[%s3662_s2 + $0x18] sm:$0xff] }
 0x4f8   :  { %1423 = vmatprep.subr.mxu1 %v1077_v21  ;;  %v1503_v0 = vmul.f32 %v1501_v60, %v3212_v16  ;;  %v1502_v11 = vmul.f32 %v1500_v8, %v3246_v34  ;;  %v3003_v21 = vld [vmem:[%s3660_s1 + $0x70] sm:$0xff] }
 0x4fa   :  { %v1585_v3 = vpop.permute.xlu1 %1584 }
 0x4fb   :  { %v1587_v9 = vsel %vm602_vm4, %v1585_v3, %v1583_v4  ;;  %v1586_v19 = vsel %vm602_vm4, %v1583_v4, %v1585_v3 }
 0x4fc   :  { %3000 = vmatmul.mubr.msk.f32.vlgmr.msra.gmra.mrb[6].mxu1 %vm71_vm3, %v2999_v61  ;;  %v1589_v14 = vmul.f32 %v1587_v9, %v3259_v39  ;;  %v1588_v25 = vmul.f32 %v1586_v19, %v3289_v54 }
 0x4fd   :  { %1424 = vmatpush1.msra.mxu1 %v3386_v20  ;;  %1487 = vmatprep.mubr.f32.mxu1 %v3104_v1 }
 0x4fe   :  { %1509 = vmatprep.subr.mxu1 %v1503_v0  ;;  %v1671_v15 = vpop.permute.xlu1 %1670 }
 0x4ff   :  { %v1673_v20 = vsel %vm702_vm6, %v1671_v15, %v1669_v17  ;;  %v1672_v29 = vsel %vm702_vm6, %v1669_v17, %v1671_v15 }
 0x500   :  { %v1675_v26 = vmul.f32 %v1673_v20, %v3301_v59  ;;  %v1674_v32 = vmul.f32 %v1672_v29, %v3331_v18 }
 0x502   :  { %v1757_v27 = vpop.permute.xlu1 %1756 }
 0x503   :  { %v1759_v30 = vsel %vm802_vm8, %v1757_v27, %v1755_v28  ;;  %v1758_v33 = vsel %vm802_vm8, %v1755_v28, %v1757_v27 }
 0x504   :  { %3002 = vmatmul.mubr.msk.f32.vlgmr.msra.gmra.mrb[6].mxu1 %vm71_vm3, %v3001_v10  ;;  %v1761_v6 = vmul.f32 %v1759_v30, %v3340_v22  ;;  %v1760_v36 = vmul.f32 %v1758_v33, %v3354_v7  ;;  %v3016_v30 = vld [vmem:[%s3660_s1 + $0x98] sm:$0xff] }
 0x505   :  { %1510 = vmatpush1.msra.mxu1 %v1502_v11  ;;  %1573 = vmatprep.mubr.f32.mxu1 %v3104_v1 }
 0x506   :  { %1595 = vmatprep.subr.mxu1 %v1589_v14 }
 0x50c   :  { %3004 = vmatmul.mubr.msk.f32.vlgmr.msra.gmra.mrb[6].mxu1 %vm71_vm3, %v3003_v21 }
 0x50d   :  { %1596 = vmatpush1.msra.mxu1 %v1588_v25  ;;  %1659 = vmatprep.mubr.f32.mxu1 %v3104_v1 }
 0x50e   :  { %1681 = vmatprep.subr.mxu1 %v1675_v26 }
 0x514   :  { %3006 = vmatmul.mubr.msk.f32.vlgmr.msra.gmra.mrb[6].mxu1 %vm71_vm3, %v3005_v31 }
 0x515   :  { %1682 = vmatpush1.msra.mxu1 %v1674_v32  ;;  %1745 = vmatprep.mubr.f32.mxu1 %v3104_v1 }
 0x516   :  { %1767 = vmatprep.subr.mxu1 %v1761_v6 }
 0x51c   :  { %3008 = vmatmul.mubr.msk.f32.vlgmr.msra.gmra.mrb[6].mxu1 %vm71_vm3, %v3007_v35 }
 0x51d   :  { %1768 = vmatpush1.msra.mxu1 %v1760_v36  ;;  %1831 = vmatprep.mubr.f32.mxu1 %v3104_v1 }
 0x524   :  { %3010 = vmatmul.mubr.msk.f32.vlgmr.msra.gmra.mrb[6].mxu1 %vm71_vm3, %v3009_v37 }
 0x525   :  { %2844 = vmatprep.mubr.f32.mxu1 %v3104_v1 }
 0x5f7   :  { %v1833_v38 = vpop.f32.mrb[6].mxu1 }
 0x5f8   :  { %v1835_v40 = vpop.f32.mrb[7].mxu1 }
 0x5f9   :  { %1840 = vmatprep.subr.mxu0 %v1835_v40 }
 0x5fa   :  { %1841 = vmatpush1.msra.mxu0 %v1833_v38 }
 0x5fb   :  { %3011 = vmatmul.mubr.msk.f32.vlgmr.msra.gmra.mrb[2].mxu0 %vm71_vm3, %v3372_v41 }
 0x5fc   :  { %1983 = vmatprep.mubr.f32.mxu0 %v3104_v1 }
 0x6ce   :  { %v1906_v44 = vpop.f32.mrb[2].mxu0 }
 0x6cf   :  { %v1908_v45 = vpop.f32.mrb[3].mxu0 }
 0x6d0   :  { %v1911_v46 = vadd.f32 %v1908_v45, %v1906_v44 }
 0x6d2   :  { %1912 = vadd.xlane.f32.xlu0 %v1911_v46 }
 0x6e8   :  { %2002 = vperm.xlu0 %3095, %v3013_v47  }
 0x75f   :  { %v1913_v48 = vpop.xlane.xlu0 %1912 }
 0x760   :  { %v1914_v49 = vmul.f32 0.001953125, %v1913_v48  ;;  %v3019_v48 = vld [vmem:[%s3660_s1 + $0xa0] sm:$0xff] }
 0x762   :  { %v1915_v50 = vsub.f32 %v1833_v38, %v1914_v49  ;;  %v1916_v51 = vsub.f32 %v1835_v40, %v1914_v49 }
 0x764   :  { %v1917_v52 = vmul.f32 %v1915_v50, %v1915_v50  ;;  %v1918_v53 = vmul.f32 %v1916_v51, %v1916_v51 }
 0x766   :  { %1919 = vmatprep.subr.mxu0 %v1918_v53 }
 0x767   :  { %1920 = vmatpush1.msra.mxu0 %v1917_v52  ;;  %v2003_v9 = vpop.permute.xlu0 %2002 }
 0x768   :  { %3012 = vmatmul.mubr.msk.f32.vlgmr.msra.gmra.mrb[4].mxu0 %vm71_vm3, %v3372_v41 }
 0x769   :  { %2105 = vmatprep.mubr.f32.mxu0 %v3104_v1 }
 0x83b   :  { %v1985_v55 = vpop.f32.mrb[4].mxu0 }
 0x83c   :  { %v1987_v56 = vpop.f32.mrb[5].mxu0 }
 0x83d   :  { %v1990_v57 = vadd.f32 %v1987_v56, %v1985_v55 }
 0x83f   :  { %1991 = vadd.xlane.f32.xlu1 %v1990_v57  ;;  %v3023_v57 = vld [vmem:[%s3660_s1 + $0xb0] sm:$0xff] }
 0x850   :  { %2011 = vperm.xlu1 %3096, %v3014_v58  }
 0x8cc   :  { %v1992_v60 = vpop.xlane.xlu1 %1991 }
 0x8cd   :  { %v1993_v61 = vmul.f32 0.001953125, %v1992_v60 }
 0x8cf   :  { %v1994_v0 = vadd.f32 1e-05, %v1993_v61 }
 0x8d0   :  { %v2012_v14 = vpop.permute.xlu1 %2011 }
 0x8d1   :  { %3099 = vrsqrt.f32 %v1994_v0 }
 0x8db   :  { %v3100_v3 = vpop.eup %3099 }
 0x8dc   :  { %v1996_v4 = vmul.f32 %v3100_v3, %v1915_v50  ;;  %v1997_v8 = vmul.f32 %v3100_v3, %v1916_v51  ;;  %v3021_v51 = vld [vmem:[%s3660_s1 + $0xa8] sm:$0xff] }
 0x8de   :  { %v2005_v10 = vmul.f32 %v2003_v9, %v1996_v4  ;;  %v2006_v11 = vmul.f32 %v2003_v9, %v1997_v8 }
 0x8e0   :  { %v2014_v15 = vadd.f32 %v2012_v14, %v2005_v10  ;;  %v2015_v17 = vadd.f32 %v2012_v14, %v2006_v11 }
 0x8e2   :  { %v3518_v19 = vmax.f32 %v2014_v15, 0.0  ;;  %v2017_v20 = vmax.f32 %v2015_v17, 0.0  ;;  %v3029_v17 = vld [vmem:[%s3660_s1 + $0xc8] sm:$0xff] }
 0x8e4   :  { %2030 = vrot.lane.b32.xlu1 %v2017_v20, %s3107_s24  ;;  %2028 = vrot.lane.b32.xlu0 %v3518_v19, %s3107_s24 }
 0x8e8   :  { %2020 = vrot.lane.b32.xlu1 %v2017_v20, %s3109_s26  ;;  %2018 = vrot.lane.b32.xlu0 %v3518_v19, %s3109_s26 }
 0x8ec   :  { %2188 = vrot.lane.b32.xlu1 %v2017_v20, %s3111_s28  ;;  %2186 = vrot.lane.b32.xlu0 %v3518_v19, %s3111_s28 }
 0x8f0   :  { %2274 = vrot.lane.b32.xlu1 %v2017_v20, %s3105_s20  ;;  %2272 = vrot.lane.b32.xlu0 %v3518_v19, %s3105_s20 }
 0x8f4   :  { %2438 = vrot.lane.b32.xlu1 %v2017_v20, %s3106_s21  ;;  %2436 = vrot.lane.b32.xlu0 %v3518_v19, %s3106_s21 }
 0x8f8   :  { %2524 = vrot.lane.b32.xlu1 %v2017_v20, %s3108_s25  ;;  %2522 = vrot.lane.b32.xlu0 %v3518_v19, %s3108_s25 }
 0x8fc   :  { %2610 = vrot.lane.b32.xlu1 %v2017_v20, %s3110_s27  ;;  %2608 = vrot.lane.b32.xlu0 %v3518_v19, %s3110_s27 }
 0x900   :  { %2696 = vrot.lane.b32.xlu1 %v2017_v20, %s3112_s29  ;;  %2694 = vrot.lane.b32.xlu0 %v3518_v19, %s3112_s29 }
 0x956   :  { %v2031_v21 = vpop.permute.xlu1 %2030  ;;  %v2029_v25 = vpop.permute.xlu0 %2028 }
 0x957   :  { %v2032_v26 = vsel %vm51_vm2, %v2029_v25, %v2031_v21  ;;  %v2033_v27 = vsel %vm51_vm2, %v2031_v21, %v2029_v25  ;;  %v3035_v25 = vld [vmem:[%s3662_s2 + $0x20] sm:$0xff] }
 0x958   :  { %v2034_v28 = vmul.f32 %v2033_v27, %v3227_v24  ;;  %v2035_v29 = vmul.f32 %v2032_v26, %v3224_v23 }
 0x95a   :  { %v2021_v31 = vpop.permute.xlu1 %2020  ;;  %2041 = vmatprep.subr.mxu0 %v2035_v29  ;;  %v2019_v32 = vpop.permute.xlu0 %2018 }
 0x95b   :  { %v2022_v6 = vsel %vm29_vm5, %v2019_v32, %v2021_v31  ;;  %v2023_v33 = vsel %vm29_vm5, %v2021_v31, %v2019_v32  ;;  %2042 = vmatpush1.msra.mxu0 %v2034_v28 }
 0x95c   :  { %v2024_v35 = vmul.f32 %v2023_v33, %v3266_v42  ;;  %v2025_v24 = vmul.f32 %v2022_v6, %v3269_v43  ;;  %3017 = vmatmul.mubr.msk.f32.vlgmr.msra.gmra.mrb[6].mxu0 %vm71_vm3, %v3016_v30  ;;  %v3015_v42 = vld [vmem:[%s3660_s1 + $0x90] sm:$0xff]  ;;  %v3036_v33 = vld [vmem:[%s3662_s2 + $0x28] sm:$0xff] }
 0x95d   :  { %2179 = vmatprep.mubr.f32.mxu0 %v3104_v1 }
 0x95e   :  { %v2189_v23 = vpop.permute.xlu1 %2188  ;;  %2115 = vmatprep.subr.mxu0 %v2025_v24  ;;  %v2187_v36 = vpop.permute.xlu0 %2186 }
 0x95f   :  { %v2190_v37 = vsel %vm224_vm7, %v2187_v36, %v2189_v23  ;;  %2116 = vmatpush1.msra.mxu0 %v2024_v35  ;;  %v2191_v38 = vsel %vm224_vm7, %v2189_v23, %v2187_v36 }
 0x960   :  { %v2193_v40 = vmul.f32 %v2190_v37, %v3311_v63  ;;  %v2192_v45 = vmul.f32 %v2191_v38, %v3308_v62 }
 0x962   :  { %v2275_v43 = vpop.permute.xlu1 %2274  ;;  %2199 = vmatprep.subr.mxu0 %v2193_v40  ;;  %v2273_v44 = vpop.permute.xlu0 %2272 }
 0x963   :  { %v2276_v46 = vsel %vm324_vm0, %v2273_v44, %v2275_v43  ;;  %v2277_v63 = vsel %vm324_vm0, %v2275_v43, %v2273_v44 }
 0x964   :  { %v2279_v47 = vmul.f32 %v2276_v46, %v3203_v12  ;;  %3018 = vmatmul.mubr.msk.f32.vlgmr.msra.gmra.mrb[6].mxu0 %vm71_vm3, %v3015_v42  ;;  %v2278_v62 = vmul.f32 %v2277_v63, %v3206_v13  ;;  %v3103_v63 = vld [vmem:[%s3658_s0] sm:$0xff] }
 0x965   :  { %2200 = vmatpush1.msra.mxu0 %v2192_v45  ;;  %2263 = vmatprep.mubr.f32.mxu0 %v3104_v1 }
 0x966   :  { %2285 = vmatprep.subr.mxu0 %v2279_v47  ;;  %v2439_v12 = vpop.permute.xlu1 %2438  ;;  %v2437_v49 = vpop.permute.xlu0 %2436 }
 0x967   :  { %v2441_v50 = vsel %vm502_vm1, %v2439_v12, %v2437_v49  ;;  %v2440_v55 = vsel %vm502_vm1, %v2437_v49, %v2439_v12 }
 0x968   :  { %v2443_v52 = vmul.f32 %v2441_v50, %v3212_v16  ;;  %v2442_v16 = vmul.f32 %v2440_v55, %v3246_v34  ;;  %v3025_v34 = vld [vmem:[%s3660_s1 + $0xb8] sm:$0xff] }
 0x96a   :  { %v2525_v13 = vpop.permute.xlu1 %2524  ;;  %v2523_v53 = vpop.permute.xlu0 %2522 }
 0x96b   :  { %v2527_v56 = vsel %vm602_vm4, %v2525_v13, %v2523_v53  ;;  %v2526_v0 = vsel %vm602_vm4, %v2523_v53, %v2525_v13 }
 0x96c   :  { %3020 = vmatmul.mubr.msk.f32.vlgmr.msra.gmra.mrb[6].mxu0 %vm71_vm3, %v3019_v48  ;;  %v2529_v58 = vmul.f32 %v2527_v56, %v3259_v39  ;;  %v2528_v39 = vmul.f32 %v2526_v0, %v3289_v54  ;;  %v3027_v54 = vld [vmem:[%s3660_s1 + $0xc0] sm:$0xff] }
 0x96d   :  { %2286 = vmatpush1.msra.mxu0 %v2278_v62  ;;  %2349 = vmatprep.mubr.f32.mxu0 %v3104_v1 }
 0x96e   :  { %2363 = vmatprep.subr.mxu0 %v2017_v20  ;;  %v2611_v60 = vpop.permute.xlu1 %2610  ;;  %v2609_v61 = vpop.permute.xlu0 %2608 }
 0x96f   :  { %v2613_v3 = vsel %vm702_vm6, %v2611_v60, %v2609_v61  ;;  %v2612_v10 = vsel %vm702_vm6, %v2609_v61, %v2611_v60 }
 0x970   :  { %v2615_v4 = vmul.f32 %v2613_v3, %v3301_v59  ;;  %v2614_v59 = vmul.f32 %v2612_v10, %v3331_v18  ;;  %v3031_v18 = vld [vmem:[%s3660_s1 + $0xd0] sm:$0xff] }
 0x972   :  { %v2697_v8 = vpop.permute.xlu1 %2696  ;;  %v2695_v9 = vpop.permute.xlu0 %2694 }
 0x973   :  { %v2699_v11 = vsel %vm802_vm8, %v2697_v8, %v2695_v9  ;;  %v2698_v15 = vsel %vm802_vm8, %v2695_v9, %v2697_v8 }
 0x974   :  { %3022 = vmatmul.mubr.msk.f32.vlgmr.msra.gmra.mrb[6].mxu0 %vm71_vm3, %v3021_v51  ;;  %v2701_v14 = vmul.f32 %v2699_v11, %v3340_v22 }
 0x975   :  { %2364 = vmatpush1.msra.mxu0 %v3518_v19  ;;  %2427 = vmatprep.mubr.f32.mxu0 %v3104_v1  ;;  %v2700_v19 = vmul.f32 %v2698_v15, %v3354_v7 }
 0x976   :  { %2449 = vmatprep.subr.mxu0 %v2443_v52 }
 0x97c   :  { %3024 = vmatmul.mubr.msk.f32.vlgmr.msra.gmra.mrb[6].mxu0 %vm71_vm3, %v3023_v57 }
 0x97d   :  { %2450 = vmatpush1.msra.mxu0 %v2442_v16  ;;  %2513 = vmatprep.mubr.f32.mxu0 %v3104_v1 }
 0x97e   :  { %2535 = vmatprep.subr.mxu0 %v2529_v58 }
 0x984   :  { %3026 = vmatmul.mubr.msk.f32.vlgmr.msra.gmra.mrb[6].mxu0 %vm71_vm3, %v3025_v34 }
 0x985   :  { %2536 = vmatpush1.msra.mxu0 %v2528_v39  ;;  %2599 = vmatprep.mubr.f32.mxu0 %v3104_v1 }
 0x986   :  { %2621 = vmatprep.subr.mxu0 %v2615_v4 }
 0x98c   :  { %3028 = vmatmul.mubr.msk.f32.vlgmr.msra.gmra.mrb[6].mxu0 %vm71_vm3, %v3027_v54 }
 0x98d   :  { %2622 = vmatpush1.msra.mxu0 %v2614_v59  ;;  %2685 = vmatprep.mubr.f32.mxu0 %v3104_v1 }
 0x98e   :  { %2707 = vmatprep.subr.mxu0 %v2701_v14 }
 0x994   :  { %3030 = vmatmul.mubr.msk.f32.vlgmr.msra.gmra.mrb[6].mxu0 %vm71_vm3, %v3029_v17 }
 0x995   :  { %2708 = vmatpush1.msra.mxu0 %v2700_v19  ;;  %2771 = vmatprep.mubr.f32.mxu0 %v3104_v1 }
 0x99c   :  { %3032 = vmatmul.mubr.msk.f32.vlgmr.msra.gmra.mrb[6].mxu0 %vm71_vm3, %v3031_v18 }
 0xa6f   :  { %v2773_v22 = vpop.f32.mrb[6].mxu0 }
 0xa70   :  { %v2775_v5 = vpop.f32.mrb[7].mxu0 }
 0xa71   :  { %2780 = vmatprep.subr.mxu1 %v2775_v5 }
 0xa72   :  { %2781 = vmatpush1.msra.mxu1 %v2773_v22 }
 0xa73   :  { %3033 = vmatmul.mubr.msk.f32.vlgmr.msra.gmra.mrb[8].mxu1 %vm71_vm3, %v3372_v41 }
 0xa74   :  { %2923 = vmatprep.mubr.f32.mxu1 %v3104_v1 }
 0xb46   :  { %v2846_v7 = vpop.f32.mrb[8].mxu1 }
 0xb47   :  { %v2848_v20 = vpop.f32.mrb[9].mxu1 }
 0xb48   :  { %v2851_v21 = vadd.f32 %v2848_v20, %v2846_v7 }
 0xb4a   :  { %2852 = vadd.xlane.f32.xlu0 %v2851_v21 }
 0xb60   :  { %2942 = vperm.xlu0 %3095, %v3035_v25  }
 0xbd7   :  { %v2853_v26 = vpop.xlane.xlu0 %2852 }
 0xbd8   :  { %v2854_v27 = vmul.f32 0.001953125, %v2853_v26 }
 0xbda   :  { %v2855_v28 = vsub.f32 %v2773_v22, %v2854_v27  ;;  %v2856_v29 = vsub.f32 %v2775_v5, %v2854_v27 }
 0xbdc   :  { %v2857_v30 = vmul.f32 %v2855_v28, %v2855_v28  ;;  %v2858_v31 = vmul.f32 %v2856_v29, %v2856_v29 }
 0xbde   :  { %2859 = vmatprep.subr.mxu1 %v2858_v31 }
 0xbdf   :  { %2860 = vmatpush1.msra.mxu1 %v2857_v30  ;;  %v2943_v40 = vpop.permute.xlu0 %2942 }
 0xbe0   :  { %3034 = vmatmul.mubr.msk.f32.vlgmr.msra.gmra.mrb[10].mxu1 %vm71_vm3, %v3372_v41 }
 0xcb3   :  { %v2925_v1 = vpop.f32.mrb[10].mxu1 }
 0xcb4   :  { %v2927_v32 = vpop.f32.mrb[11].mxu1 }
 0xcb5   :  { %v2930_v6 = vadd.f32 %v2927_v32, %v2925_v1 }
 0xcb7   :  { %2931 = vadd.xlane.f32.xlu1 %v2930_v6 }
 0xcc8   :  { %2951 = vperm.xlu1 %3096, %v3036_v33  }
 0xd44   :  { %v2932_v35 = vpop.xlane.xlu1 %2931 }
 0xd45   :  { %v2933_v24 = vmul.f32 0.001953125, %v2932_v35 }
 0xd47   :  { %v2934_v23 = vadd.f32 1e-05, %v2933_v24 }
 0xd48   :  { %v2952_v41 = vpop.permute.xlu1 %2951 }
 0xd49   :  { %3101 = vrsqrt.f32 %v2934_v23 }
 0xd53   :  { %v3102_v36 = vpop.eup %3101 }
 0xd54   :  { %v2936_v37 = vmul.f32 %v3102_v36, %v2855_v28  ;;  %v2937_v38 = vmul.f32 %v3102_v36, %v2856_v29 }
 0xd56   :  { %v2945_v42 = vmul.f32 %v2943_v40, %v2936_v37  ;;  %v2946_v43 = vmul.f32 %v2943_v40, %v2937_v38 }
 0xd58   :  { %v2954_v44 = vadd.f32 %v2952_v41, %v2945_v42  ;;  %v2955_v45 = vadd.f32 %v2952_v41, %v2946_v43 }
 0xd5a   :  { %v2956_v46 = vmax.f32 %v2954_v44, 0.0  ;;  %v2957_v47 = vmax.f32 %v2955_v45, 0.0 }
 0xd5c   :  { %v2958_v48 = vadd.f32 %v3103_v63, %v2956_v46  ;;  %v2959_v62 = vadd.f32 %v2957_v47, %v3158_v2 }
 0xd5e   :  { %2960 = vst [vmem:[%s3663_s5] sm:$0xff] %v2958_v48  ;;  %2961 = vst [vmem:[%s3663_s5 + $0x8] sm:$0xff] %v2959_v62 }

</bundles_post_ra>
